<compile_context>
chip_gen: v7x
topology: tpu7x:2x2x1
jax: 0.10.0
libtpu: 0.0.40
codegen_flags: <defaults>
</compile_context>

<pallas_src>
import math
import functools

import jax
import jax.numpy as jnp
from jax.experimental import pallas as pl
from jax.experimental.pallas import tpu as pltpu

NEG = jnp.float32(-1e30)   # large finite negative: avoids NaN for fully-masked rows


def _round_up(x, m):
    return (x + m - 1) // m * m


# ---------------------------------------------------------------------------
# Tiled matmul kernel:  y = relu?(x @ w + b)
# ---------------------------------------------------------------------------

def _matmul_kernel(x_ref, w_ref, b_ref, o_ref, acc_ref, *, relu):
    @pl.when(pl.program_id(2) == 0)
    def _():
        acc_ref[...] = jnp.zeros_like(acc_ref)

    acc_ref[...] += jnp.dot(
        x_ref[...].astype(jnp.bfloat16),
        w_ref[...].astype(jnp.bfloat16),
        preferred_element_type=jnp.float32,
    )

    @pl.when(pl.program_id(2) == pl.num_programs(2) - 1)
    def _():
        y = acc_ref[...] + b_ref[...]
        if relu:
            y = jnp.maximum(y, 0.0)
        o_ref[...] = y.astype(o_ref.dtype)


def linear(x, w, b, relu=False):
    """x: (M, K) f32, w: (K, N) (pre-transposed, bf16 or f32), b: (N,) -> (M, N) f32."""
    M, K = x.shape
    N = w.shape[1]
    tm = min(256, _round_up(M, 8))
    tn = min(256, _round_up(N, 128))
    tk = min(512, _round_up(K, 128))
    Mp, Np, Kp = _round_up(M, tm), _round_up(N, tn), _round_up(K, tk)

    xp = x if (Mp, Kp) == (M, K) else jnp.pad(x, ((0, Mp - M), (0, Kp - K)))
    wp = w if (Kp, Np) == (K, N) else jnp.pad(w, ((0, Kp - K), (0, Np - N)))
    bp = (b if Np == N else jnp.pad(b, (0, Np - N))).reshape(1, Np).astype(jnp.float32)

    out = pl.pallas_call(
        functools.partial(_matmul_kernel, relu=relu),
        grid=(Mp // tm, Np // tn, Kp // tk),
        out_shape=jax.ShapeDtypeStruct((Mp, Np), jnp.float32),
        in_specs=[
            pl.BlockSpec((tm, tk), lambda i, j, k: (i, k)),
            pl.BlockSpec((tk, tn), lambda i, j, k: (k, j)),
            pl.BlockSpec((1, tn), lambda i, j, k: (0, j)),
        ],
        out_specs=pl.BlockSpec((tm, tn), lambda i, j, k: (i, j)),
        scratch_shapes=[pltpu.VMEM((tm, tn), jnp.float32)],
        compiler_params=pltpu.CompilerParams(
            dimension_semantics=("parallel", "parallel", "arbitrary")),
    )(xp, wp, bp)
    return out[:M, :N]


# ---------------------------------------------------------------------------
# (residual add +) LayerNorm kernel, tiled over rows
# ---------------------------------------------------------------------------

def _ln_kernel(*refs, eps, residual):
    if residual:
        x_ref, y_ref, g_ref, b_ref, o_ref = refs
        x = x_ref[...] + y_ref[...]
    else:
        x_ref, g_ref, b_ref, o_ref = refs
        x = x_ref[...]
    mean = jnp.mean(x, axis=-1, keepdims=True)
    var = jnp.mean((x - mean) ** 2, axis=-1, keepdims=True)
    inv = jax.lax.rsqrt(var + eps)
    o_ref[...] = ((x - mean) * inv) * g_ref[...] + b_ref[...]


def _layer_norm_impl(x, y, g, b, eps=1e-5):
    M, E = x.shape
    tm = min(512, _round_up(M, 8))
    Mp = _round_up(M, tm)
    pad = Mp - M
    xs = [jnp.pad(x, ((0, pad), (0, 0))) if pad else x]
    if y is not None:
        xs.append(jnp.pad(y, ((0, pad), (0, 0))) if pad else y)

    in_specs = [pl.BlockSpec((tm, E), lambda i: (i, 0)) for _ in xs]
    in_specs += [pl.BlockSpec((1, E), lambda i: (0, 0))] * 2

    out = pl.pallas_call(
        functools.partial(_ln_kernel, eps=eps, residual=(y is not None)),
        grid=(Mp // tm,),
        out_shape=jax.ShapeDtypeStruct((Mp, E), jnp.float32),
        in_specs=in_specs,
        out_specs=pl.BlockSpec((tm, E), lambda i: (i, 0)),
        compiler_params=pltpu.CompilerParams(dimension_semantics=("parallel",)),
    )(*xs, g.reshape(1, E), b.reshape(1, E))
    return out[:M] if pad else out


def layer_norm(x, g, b):
    return _layer_norm_impl(x, None, g, b)


def add_layer_norm(x, y, g, b):
    """LayerNorm(x + y), fused."""
    return _layer_norm_impl(x, y, g, b)


# ---------------------------------------------------------------------------
# Attention: grid over batch, all heads per step, mask built in-kernel
# ---------------------------------------------------------------------------

def _attn_kernel(q_ref, k_ref, v_ref, am_ref, kpm_ref, o_ref, *, scale):
    q = (q_ref[0] * scale).astype(jnp.bfloat16)      # (H, Lq, Dh)
    k = k_ref[0].astype(jnp.bfloat16)                # (H, Lk, Dh)
    v = v_ref[0].astype(jnp.bfloat16)                # (H, Lk, Dh)

    s = jnp.einsum("hqd,hkd->hqk", q, k, preferred_element_type=jnp.float32)
    s = s + am_ref[...][None, :, :] + kpm_ref[...]   # (H,Lq,Lk) + (1,Lq,Lk) + (1,1,Lk)

    s = s - jnp.max(s, axis=-1, keepdims=True)
    p = jnp.exp(s)
    p = p * pl.reciprocal(jnp.sum(p, axis=-1, keepdims=True), approx=True)

    o_ref[0] = jnp.einsum("hqk,hkd->hqd", p.astype(jnp.bfloat16), v,
                          preferred_element_type=jnp.float32).astype(o_ref.dtype)


def attention_core(q, k, v, attn_mask, kpm, scale):
    """q: (N,H,Lq,Dh), k/v: (N,H,Lk,Dh), attn_mask: (Lq,Lk) additive,
    kpm: (N,1,Lk) additive -> (N,H,Lq,Dh)."""
    Nb, H, Lq, Dh = q.shape
    Lk = k.shape[2]
    return pl.pallas_call(
        functools.partial(_attn_kernel, scale=scale),
        grid=(Nb,),
        out_shape=jax.ShapeDtypeStruct((Nb, H, Lq, Dh), jnp.float32),
        in_specs=[
            pl.BlockSpec((1, H, Lq, Dh), lambda b: (b, 0, 0, 0)),
            pl.BlockSpec((1, H, Lk, Dh), lambda b: (b, 0, 0, 0)),
            pl.BlockSpec((1, H, Lk, Dh), lambda b: (b, 0, 0, 0)),
            pl.BlockSpec((Lq, Lk), lambda b: (0, 0)),       # shared across batch & heads
            pl.BlockSpec((1, 1, Lk), lambda b: (b, 0, 0)),  # per-batch key padding row
        ],
        out_specs=pl.BlockSpec((1, H, Lq, Dh), lambda b: (b, 0, 0, 0)),
        compiler_params=pltpu.CompilerParams(dimension_semantics=("parallel",)),
    )(q, k, v, attn_mask, kpm)


def _additive_attn_mask(attn_mask, Lq, Lk):
    if attn_mask is None:
        return jnp.zeros((Lq, Lk), jnp.float32)
    am = attn_mask
    if am.dtype == jnp.bool_:
        return jnp.where(am, NEG, jnp.float32(0.0))
    return jnp.maximum(am.astype(jnp.float32), NEG)   # clamp -inf -> -1e30


def _additive_kpm(kpm, Nb, Lk):
    if kpm is None:
        return jnp.zeros((Nb, 1, Lk), jnp.float32)
    if kpm.dtype == jnp.bool_:
        add = jnp.where(kpm, NEG, jnp.float32(0.0))
    else:
        add = jnp.maximum(kpm.astype(jnp.float32), NEG)
    return add.reshape(Nb, 1, Lk)


# ---------------------------------------------------------------------------
# Transformer layers (PyTorch nn.Transformer, post-norm, ReLU)
# ---------------------------------------------------------------------------

def multihead_attention(query, key, value, p, nhead, attn_mask, key_padding_mask):
    """PyTorch nn.MultiheadAttention semantics (batch_first=False). Returns (Lq*Nb, E)."""
    Lq, Nb, E = query.shape
    Lk = key.shape[0]
    Dh = E // nhead

    q_in = query.reshape(Lq * Nb, E)
    if (query is key) and (key is value):
        qkv = linear(q_in, p["in_w"], p["in_b"])                 # fused QKV, one matmul
        q, k, v = jnp.split(qkv, 3, axis=1)
    else:
        kv_in = key.reshape(Lk * Nb, E)
        q = linear(q_in, p["in_w"][:, :E], p["in_b"][:E])
        kv = linear(kv_in, p["in_w"][:, E:], p["in_b"][E:])      # fused KV
        k, v = jnp.split(kv, 2, axis=1)

    # (L*N, E) -> (N, H, L, Dh)   (same head grouping as PyTorch's view/transpose)
    q = q.reshape(Lq, Nb, nhead, Dh).transpose(1, 2, 0, 3)
    k = k.reshape(Lk, Nb, nhead, Dh).transpose(1, 2, 0, 3)
    v = v.reshape(Lk, Nb, nhead, Dh).transpose(1, 2, 0, 3)

    am = _additive_attn_mask(attn_mask, Lq, Lk)
    kpm = _additive_kpm(key_padding_mask, Nb, Lk)

    o = attention_core(q, k, v, am, kpm, 1.0 / math.sqrt(Dh))    # (N, H, Lq, Dh)
    o = o.transpose(2, 0, 1, 3).reshape(Lq * Nb, E)
    return linear(o, p["out_w"], p["out_b"])


def encoder_layer(x, p, nhead, src_mask, src_kpm):
    L, Nb, E = x.shape
    x2 = x.reshape(L * Nb, E)
    a = multihead_attention(x, x, x, p["sa"], nhead, src_mask, src_kpm)
    x2 = add_layer_norm(x2, a, p["ln1_g"], p["ln1_b"])
    h = linear(x2, p["ff_w1"], p["ff_b1"], relu=True)
    h = linear(h, p["ff_w2"], p["ff_b2"])
    x2 = add_layer_norm(x2, h, p["ln2_g"], p["ln2_b"])
    return x2.reshape(L, Nb, E)


def decoder_layer(x, memory, p, nhead, tgt_mask, tgt_kpm, mem_kpm):
    L, Nb, E = x.shape
    x2 = x.reshape(L * Nb, E)
    a = multihead_attention(x, x, x, p["sa"], nhead, tgt_mask, tgt_kpm)
    x2 = add_layer_norm(x2, a, p["ln1_g"], p["ln1_b"])
    x3 = x2.reshape(L, Nb, E)
    c = multihead_attention(x3, memory, memory, p["ca"], nhead, None, mem_kpm)
    x2 = add_layer_norm(x2, c, p["ln2_g"], p["ln2_b"])
    h = linear(x2, p["ff_w1"], p["ff_b1"], relu=True)
    h = linear(h, p["ff_w2"], p["ff_b2"])
    x2 = add_layer_norm(x2, h, p["ln3_g"], p["ln3_b"])
    return x2.reshape(L, Nb, E)


# ---------------------------------------------------------------------------
# Model setup / forward
# ---------------------------------------------------------------------------

def make_pos_embedding(emb_size, maxlen=5000):
    den = jnp.exp(-jnp.arange(0, emb_size, 2, dtype=jnp.float32) * math.log(10000.0) / emb_size)
    pos = jnp.arange(0, maxlen, dtype=jnp.float32).reshape(maxlen, 1)
    pe = jnp.zeros((maxlen, emb_size), jnp.float32)
    pe = pe.at[:, 0::2].set(jnp.sin(pos * den))
    pe = pe.at[:, 1::2].set(jnp.cos(pos * den))
    return pe[:, None, :]                   # (maxlen, 1, emb_size)


def init_params(key, num_enc, num_dec, emb_size, nhead, src_vocab, tgt_vocab, dim_ff):
    keys = iter(jax.random.split(key, 256))

    # Matmul weights stored pre-transposed as (in, out) and in bf16 (halved HBM traffic,
    # bf16 MXU path). Biases / LN params / embeddings stay f32.
    def w(shape, scale=0.05, dtype=jnp.bfloat16):
        return (scale * jax.random.normal(next(keys), shape, jnp.float32)).astype(dtype)

    def mha_params():
        return dict(in_w=w((emb_size, 3 * emb_size)), in_b=w((3 * emb_size,), dtype=jnp.float32),
                    out_w=w((emb_size, emb_size)), out_b=w((emb_size,), dtype=jnp.float32))

    def ln():
        return jnp.ones((emb_size,), jnp.float32), jnp.zeros((emb_size,), jnp.float32)

    def enc_layer_params():
        g1, b1 = ln(); g2, b2 = ln()
        return dict(sa=mha_params(),
                    ln1_g=g1, ln1_b=b1,
                    ff_w1=w((emb_size, dim_ff)), ff_b1=w((dim_ff,), dtype=jnp.float32),
                    ff_w2=w((dim_ff, emb_size)), ff_b2=w((emb_size,), dtype=jnp.float32),
                    ln2_g=g2, ln2_b=b2)

    def dec_layer_params():
        g1, b1 = ln(); g2, b2 = ln(); g3, b3 = ln()
        return dict(sa=mha_params(), ca=mha_params(),
                    ln1_g=g1, ln1_b=b1, ln2_g=g2, ln2_b=b2, ln3_g=g3, ln3_b=b3,
                    ff_w1=w((emb_size, dim_ff)), ff_b1=w((dim_ff,), dtype=jnp.float32),
                    ff_w2=w((dim_ff, emb_size)), ff_b2=w((emb_size,), dtype=jnp.float32))

    eg, eb = ln()
    dg, db = ln()
    return dict(
        src_emb=w((src_vocab, emb_size), 0.1, jnp.float32),
        tgt_emb=w((tgt_vocab, emb_size), 0.1, jnp.float32),
        pos_embedding=make_pos_embedding(emb_size),
        encoder_layers=[enc_layer_params() for _ in range(num_enc)],
        decoder_layers=[dec_layer_params() for _ in range(num_dec)],
        enc_norm_g=eg, enc_norm_b=eb,
        dec_norm_g=dg, dec_norm_b=db,
        gen_w=w((emb_size, tgt_vocab)), gen_b=w((tgt_vocab,), dtype=jnp.float32),
    )


def seq2seq_forward(params, src, trg, src_mask, tgt_mask,
                    src_padding_mask, tgt_padding_mask, memory_key_padding_mask,
                    *, nhead, emb_size):
    pe = params["pos_embedding"]
    # TokenEmbedding * sqrt(emb_size) + PositionalEncoding (dropout = identity)
    src_emb = jnp.take(params["src_emb"], src, axis=0) * math.sqrt(emb_size) + pe[: src.shape[0]]
    tgt_emb = jnp.take(params["tgt_emb"], trg, axis=0) * math.sqrt(emb_size) + pe[: trg.shape[0]]

    memory = src_emb
    for p in params["encoder_layers"]:
        memory = encoder_layer(memory, p, nhead, src_mask, src_padding_mask)
    S, Nb, E = memory.shape
    memory = layer_norm(memory.reshape(S * Nb, E),
                        params["enc_norm_g"], params["enc_norm_b"]).reshape(S, Nb, E)

    x = tgt_emb
    for p in params["decoder_layers"]:
        x = decoder_layer(x, memory, p, nhead, tgt_mask,
                          tgt_padding_mask, memory_key_padding_mask)
    T, Nb, E = x.shape
    x = layer_norm(x.reshape(T * Nb, E),
                   params["dec_norm_g"], params["dec_norm_b"]).reshape(T, Nb, E)

    logits = linear(x.reshape(T * Nb, E), params["gen_w"], params["gen_b"])
    return logits.reshape(T, Nb, -1)


# ---------------------------------------------------------------------------
# Example run
# ---------------------------------------------------------------------------

if __name__ == "__main__":
    NUM_ENC, NUM_DEC = 2, 2
    EMB, NHEAD = 32, 4
    SRC_VOCAB, TGT_VOCAB = 50, 60
    DIM_FF = 64
    S, T, N = 8, 8, 2

    key = jax.random.PRNGKey(0)
    kp, ks, kt = jax.random.split(key, 3)

    params = init_params(kp, NUM_ENC, NUM_DEC, EMB, NHEAD, SRC_VOCAB, TGT_VOCAB, DIM_FF)

    src = jax.random.randint(ks, (S, N), 0, SRC_VOCAB, dtype=jnp.int32)
    trg = jax.random.randint(kt, (T, N), 0, TGT_VOCAB, dtype=jnp.int32)

    src_mask = jnp.zeros((S, S), jnp.float32)
    tgt_mask = jnp.where(jnp.triu(jnp.ones((T, T), bool), k=1),
                         jnp.float32(-jnp.inf), jnp.float32(0.0))
    src_padding_mask = jnp.zeros((N, S), bool).at[1, S - 2:].set(True)
    tgt_padding_mask = jnp.zeros((N, T), bool).at[1, T - 1:].set(True)
    memory_key_padding_mask = src_padding_mask

    fwd = jax.jit(functools.partial(seq2seq_forward, nhead=NHEAD, emb_size=EMB))
    out = fwd(params, src, trg, src_mask, tgt_mask,
              src_padding_mask, tgt_padding_mask, memory_key_padding_mask)
    out = jax.block_until_ready(out)

    assert out.shape == (T, N, TGT_VOCAB), out.shape
    assert bool(jnp.all(jnp.isfinite(out))), "non-finite output"
    print("KERNEL_OK")
</pallas_src>

<mosaic_0001>
module attributes {stable_mosaic.version = 11 : i64} {
  func.func @_attn_kernel(%arg0: i32, %arg1: memref<1x4x8x8xf32, #tpu.memory_space<vmem>>, %arg2: memref<1x4x8x8xf32, #tpu.memory_space<vmem>>, %arg3: memref<1x4x8x8xf32, #tpu.memory_space<vmem>>, %arg4: memref<8x8xf32, #tpu.memory_space<vmem>>, %arg5: memref<1x1x8xf32, #tpu.memory_space<vmem>>, %arg6: memref<1x4x8x8xf32, #tpu.memory_space<vmem>>) attributes {dimension_semantics = [#tpu.dimension_semantics<parallel>], iteration_bounds = array<i64: 2>, scalar_prefetch = 0 : i64, scratch_operands = 0 : i64, tpu.core_type = #tpu.core_type<tc>, window_params = [{transform_indices = @transform_0, window_bounds = array<i64: 1, 4, 8, 8>}, {transform_indices = @transform_1, window_bounds = array<i64: 1, 4, 8, 8>}, {transform_indices = @transform_2, window_bounds = array<i64: 1, 4, 8, 8>}, {pipeline_mode = #tpu.pipeline_mode<synchronous>, transform_indices = @transform_3, window_bounds = array<i64: 8, 8>}, {transform_indices = @transform_4, window_bounds = array<i64: 1, 1, 8>}, {transform_indices = @transform_5, window_bounds = array<i64: 1, 4, 8, 8>}]} {
    %c0 = arith.constant 0 : index
    %c0_0 = arith.constant 0 : index
    %c0_1 = arith.constant 0 : index
    %c0_2 = arith.constant 0 : index
    %0 = vector.load %arg1[%c0, %c0_0, %c0_1, %c0_2] : memref<1x4x8x8xf32, #tpu.memory_space<vmem>>, vector<1x4x8x8xf32>
    %1 = vector.shape_cast %0 : vector<1x4x8x8xf32> to vector<4x8x8xf32>
    %cst = arith.constant 0.353553385 : f32
    %2 = vector.broadcast %cst : f32 to vector<4x8x8xf32>
    %3 = arith.mulf %1, %2 : vector<4x8x8xf32>
    %4 = arith.truncf %3 : vector<4x8x8xf32> to vector<4x8x8xbf16>
    %c0_3 = arith.constant 0 : index
    %c0_4 = arith.constant 0 : index
    %c0_5 = arith.constant 0 : index
    %c0_6 = arith.constant 0 : index
    %5 = vector.load %arg2[%c0_3, %c0_4, %c0_5, %c0_6] : memref<1x4x8x8xf32, #tpu.memory_space<vmem>>, vector<1x4x8x8xf32>
    %6 = vector.shape_cast %5 : vector<1x4x8x8xf32> to vector<4x8x8xf32>
    %7 = arith.truncf %6 : vector<4x8x8xf32> to vector<4x8x8xbf16>
    %c0_7 = arith.constant 0 : index
    %c0_8 = arith.constant 0 : index
    %c0_9 = arith.constant 0 : index
    %c0_10 = arith.constant 0 : index
    %8 = vector.load %arg3[%c0_7, %c0_8, %c0_9, %c0_10] : memref<1x4x8x8xf32, #tpu.memory_space<vmem>>, vector<1x4x8x8xf32>
    %9 = vector.shape_cast %8 : vector<1x4x8x8xf32> to vector<4x8x8xf32>
    %10 = arith.truncf %9 : vector<4x8x8xf32> to vector<4x8x8xbf16>
    "tpu.trace_start"() <{level = 10 : i32, message = "hqd,hkd->hqk"}> : () -> ()
    %cst_11 = arith.constant dense<0.000000e+00> : vector<4x8x8xf32>
    %11 = tpu.matmul %4, %7, %cst_11 {dimension_numbers = #tpu.dot_dimension_numbers<[2], [2], [1], [1], [0, 0, 0, 1, 1, 1], [0], [0]>} : vector<4x8x8xbf16>, vector<4x8x8xbf16>, vector<4x8x8xf32> -> vector<4x8x8xf32>
    "tpu.trace_stop"() : () -> ()
    %c0_12 = arith.constant 0 : index
    %c0_13 = arith.constant 0 : index
    %12 = vector.load %arg4[%c0_12, %c0_13] : memref<8x8xf32, #tpu.memory_space<vmem>>, vector<8x8xf32>
    %13 = vector.shape_cast %12 : vector<8x8xf32> to vector<1x8x8xf32>
    %14 = vector.broadcast %13 : vector<1x8x8xf32> to vector<4x8x8xf32>
    %15 = arith.addf %11, %14 : vector<4x8x8xf32>
    %c0_14 = arith.constant 0 : index
    %c0_15 = arith.constant 0 : index
    %c0_16 = arith.constant 0 : index
    %16 = vector.load %arg5[%c0_14, %c0_15, %c0_16] : memref<1x1x8xf32, #tpu.memory_space<vmem>>, vector<1x1x8xf32>
    %17 = vector.broadcast %16 : vector<1x1x8xf32> to vector<4x8x8xf32>
    %18 = arith.addf %15, %17 : vector<4x8x8xf32>
    %cst_17 = arith.constant dense<0xFF800000> : vector<4x8xf32>
    %19 = vector.multi_reduction <maximumf>, %18, %cst_17 [2] : vector<4x8x8xf32> to vector<4x8xf32>
    %20 = vector.shape_cast %19 : vector<4x8xf32> to vector<4x8x1xf32>
    %21 = vector.broadcast %20 : vector<4x8x1xf32> to vector<4x8x8xf32>
    %22 = arith.subf %18, %21 : vector<4x8x8xf32>
    %23 = math.exp %22 : vector<4x8x8xf32>
    %cst_18 = arith.constant dense<0.000000e+00> : vector<4x8xf32>
    %24 = vector.multi_reduction <add>, %23, %cst_18 [2] : vector<4x8x8xf32> to vector<4x8xf32>
    %25 = vector.shape_cast %24 : vector<4x8xf32> to vector<4x8x1xf32>
    %26 = tpu.reciprocal %25 {approx = true} : vector<4x8x1xf32> -> vector<4x8x1xf32>
    %27 = vector.broadcast %26 : vector<4x8x1xf32> to vector<4x8x8xf32>
    %28 = arith.mulf %23, %27 : vector<4x8x8xf32>
    %29 = arith.truncf %28 : vector<4x8x8xf32> to vector<4x8x8xbf16>
    "tpu.trace_start"() <{level = 10 : i32, message = "hqk,hkd->hqd"}> : () -> ()
    %cst_19 = arith.constant dense<0.000000e+00> : vector<4x8x8xf32>
    %30 = tpu.matmul %29, %10, %cst_19 {dimension_numbers = #tpu.dot_dimension_numbers<[2], [1], [1], [2], [0, 0, 0, 1, 1, 2], [0], [0]>} : vector<4x8x8xbf16>, vector<4x8x8xbf16>, vector<4x8x8xf32> -> vector<4x8x8xf32>
    "tpu.trace_stop"() : () -> ()
    %c0_20 = arith.constant 0 : index
    %c0_21 = arith.constant 0 : index
    %c0_22 = arith.constant 0 : index
    %c0_23 = arith.constant 0 : index
    %31 = vector.load %arg6[%c0_20, %c0_21, %c0_22, %c0_23] : memref<1x4x8x8xf32, #tpu.memory_space<vmem>>, vector<1x4x8x8xf32>
    %32 = vector.shape_cast %31 : vector<1x4x8x8xf32> to vector<4x8x8xf32>
    %33 = vector.shape_cast %30 : vector<4x8x8xf32> to vector<1x4x8x8xf32>
    tpu.vector_store %arg6[%c0_20, %c0_21, %c0_22, %c0_23], %33 {strides = array<i32>} : memref<1x4x8x8xf32, #tpu.memory_space<vmem>>, vector<1x4x8x8xf32>,
    return
  }
  func.func @transform_0(%arg0: i32) -> (i32, i32, i32, i32) {
    %c0_i32 = arith.constant 0 : i32
    %c0_i32_0 = arith.constant 0 : i32
    %c0_i32_1 = arith.constant 0 : i32
    %c0_i32_2 = arith.constant 0 : i32
    return %arg0, %c0_i32, %c0_i32_0, %c0_i32_1 : i32, i32, i32, i32
  }
  func.func @transform_1(%arg0: i32) -> (i32, i32, i32, i32) {
    %c0_i32 = arith.constant 0 : i32
    %c0_i32_0 = arith.constant 0 : i32
    %c0_i32_1 = arith.constant 0 : i32
    %c0_i32_2 = arith.constant 0 : i32
    return %arg0, %c0_i32, %c0_i32_0, %c0_i32_1 : i32, i32, i32, i32
  }
  func.func @transform_2(%arg0: i32) -> (i32, i32, i32, i32) {
    %c0_i32 = arith.constant 0 : i32
    %c0_i32_0 = arith.constant 0 : i32
    %c0_i32_1 = arith.constant 0 : i32
    %c0_i32_2 = arith.constant 0 : i32
    return %arg0, %c0_i32, %c0_i32_0, %c0_i32_1 : i32, i32, i32, i32
  }
  func.func @transform_3(%arg0: i32) -> (i32, i32) {
    %c0_i32 = arith.constant 0 : i32
    %c0_i32_0 = arith.constant 0 : i32
    %c0_i32_1 = arith.constant 0 : i32
    return %c0_i32, %c0_i32_0 : i32, i32
  }
  func.func @transform_4(%arg0: i32) -> (i32, i32, i32) {
    %c0_i32 = arith.constant 0 : i32
    %c0_i32_0 = arith.constant 0 : i32
    %c0_i32_1 = arith.constant 0 : i32
    return %arg0, %c0_i32, %c0_i32_0 : i32, i32, i32
  }
  func.func @transform_5(%arg0: i32) -> (i32, i32, i32, i32) {
    %c0_i32 = arith.constant 0 : i32
    %c0_i32_0 = arith.constant 0 : i32
    %c0_i32_1 = arith.constant 0 : i32
    %c0_i32_2 = arith.constant 0 : i32
    return %arg0, %c0_i32, %c0_i32_0, %c0_i32_1 : i32, i32, i32, i32
  }
}

module attributes {stable_mosaic.version = 11 : i64} {
  func.func @_matmul_kernel(%arg0: i32, %arg1: i32, %arg2: i32, %arg3: memref<16x128xf32, #tpu.memory_space<vmem>>, %arg4: memref<128x128xbf16, #tpu.memory_space<vmem>>, %arg5: memref<1x128xf32, #tpu.memory_space<vmem>>, %arg6: memref<16x128xf32, #tpu.memory_space<vmem>>, %arg7: memref<16x128xf32, #tpu.memory_space<vmem>>) attributes {dimension_semantics = [#tpu.dimension_semantics<parallel>, #tpu.dimension_semantics<parallel>, #tpu.dimension_semantics<arbitrary>], iteration_bounds = array<i64: 1, 1, 1>, scalar_prefetch = 0 : i64, scratch_operands = 1 : i64, tpu.core_type = #tpu.core_type<tc>, window_params = [{transform_indices = @transform_0, window_bounds = array<i64: 16, 128>}, {transform_indices = @transform_1, window_bounds = array<i64: 128, 128>}, {transform_indices = @transform_2, window_bounds = array<i64: 1, 128>}, {transform_indices = @transform_3, window_bounds = array<i64: 16, 128>}]} {
    %c0_i32 = arith.constant 0 : i32
    %0 = arith.cmpi eq, %arg2, %c0_i32 : i32
    %1 = arith.extui %0 : i1 to i32
    %c0_i32_0 = arith.constant 0 : i32
    %2 = arith.cmpi ne, %1, %c0_i32_0 : i32
    scf.if %2 {
      %cst_10 = arith.constant 0.000000e+00 : f32
      %13 = vector.broadcast %cst_10 : f32 to vector<16x128xf32>
      %c0_11 = arith.constant 0 : index
      %c0_12 = arith.constant 0 : index
      %14 = vector.load %arg7[%c0_11, %c0_12] : memref<16x128xf32, #tpu.memory_space<vmem>>, vector<16x128xf32>
      tpu.vector_store %arg7[%c0_11, %c0_12], %13 {strides = array<i32>} : memref<16x128xf32, #tpu.memory_space<vmem>>, vector<16x128xf32>,
    } else {
    }
    %c0 = arith.constant 0 : index
    %c0_1 = arith.constant 0 : index
    %3 = vector.load %arg7[%c0, %c0_1] : memref<16x128xf32, #tpu.memory_space<vmem>>, vector<16x128xf32>
    %c0_2 = arith.constant 0 : index
    %c0_3 = arith.constant 0 : index
    %4 = vector.load %arg3[%c0_2, %c0_3] : memref<16x128xf32, #tpu.memory_space<vmem>>, vector<16x128xf32>
    %5 = arith.truncf %4 : vector<16x128xf32> to vector<16x128xbf16>
    %c0_4 = arith.constant 0 : index
    %c0_5 = arith.constant 0 : index
    %6 = vector.load %arg4[%c0_4, %c0_5] : memref<128x128xbf16, #tpu.memory_space<vmem>>, vector<128x128xbf16>
    %cst = arith.constant dense<0.000000e+00> : vector<16x128xf32>
    %7 = tpu.matmul %5, %6, %cst {dimension_numbers = #tpu.dot_dimension_numbers<[1], [0], [0], [1], [0, 0, 1, 1], [], []>} : vector<16x128xbf16>, vector<128x128xbf16>, vector<16x128xf32> -> vector<16x128xf32>
    %8 = arith.addf %3, %7 : vector<16x128xf32>
    %c0_6 = arith.constant 0 : index
    %c0_7 = arith.constant 0 : index
    %9 = vector.load %arg7[%c0_6, %c0_7] : memref<16x128xf32, #tpu.memory_space<vmem>>, vector<16x128xf32>
    tpu.vector_store %arg7[%c0_6, %c0_7], %8 {strides = array<i32>} : memref<16x128xf32, #tpu.memory_space<vmem>>, vector<16x128xf32>,
    %c0_i32_8 = arith.constant 0 : i32
    %10 = arith.cmpi eq, %arg2, %c0_i32_8 : i32
    %11 = arith.extui %10 : i1 to i32
    %c0_i32_9 = arith.constant 0 : i32
    %12 = arith.cmpi ne, %11, %c0_i32_9 : i32
    scf.if %12 {
      %c0_10 = arith.constant 0 : index
      %c0_11 = arith.constant 0 : index
      %13 = vector.load %arg7[%c0_10, %c0_11] : memref<16x128xf32, #tpu.memory_space<vmem>>, vector<16x128xf32>
      %c0_12 = arith.constant 0 : index
      %c0_13 = arith.constant 0 : index
      %14 = vector.load %arg5[%c0_12, %c0_13] : memref<1x128xf32, #tpu.memory_space<vmem>>, vector<1x128xf32>
      %15 = vector.broadcast %14 : vector<1x128xf32> to vector<16x128xf32>
      %16 = arith.addf %13, %15 : vector<16x128xf32>
      %c0_14 = arith.constant 0 : index
      %c0_15 = arith.constant 0 : index
      %17 = vector.load %arg6[%c0_14, %c0_15] : memref<16x128xf32, #tpu.memory_space<vmem>>, vector<16x128xf32>
      tpu.vector_store %arg6[%c0_14, %c0_15], %16 {strides = array<i32>} : memref<16x128xf32, #tpu.memory_space<vmem>>, vector<16x128xf32>,
    } else {
    }
    return
  }
  func.func @transform_0(%arg0: i32, %arg1: i32, %arg2: i32) -> (i32, i32) {
    %c0_i32 = arith.constant 0 : i32
    return %arg0, %arg2 : i32, i32
  }
  func.func @transform_1(%arg0: i32, %arg1: i32, %arg2: i32) -> (i32, i32) {
    %c0_i32 = arith.constant 0 : i32
    return %arg2, %arg1 : i32, i32
  }
  func.func @transform_2(%arg0: i32, %arg1: i32, %arg2: i32) -> (i32, i32) {
    %c0_i32 = arith.constant 0 : i32
    %c0_i32_0 = arith.constant 0 : i32
    return %c0_i32, %arg1 : i32, i32
  }
  func.func @transform_3(%arg0: i32, %arg1: i32, %arg2: i32) -> (i32, i32) {
    %c0_i32 = arith.constant 0 : i32
    return %arg0, %arg1 : i32, i32
  }
}

module attributes {stable_mosaic.version = 11 : i64} {
  func.func @_matmul_kernel(%arg0: i32, %arg1: i32, %arg2: i32, %arg3: memref<16x128xf32, #tpu.memory_space<vmem>>, %arg4: memref<128x128xbf16, #tpu.memory_space<vmem>>, %arg5: memref<1x128xf32, #tpu.memory_space<vmem>>, %arg6: memref<16x128xf32, #tpu.memory_space<vmem>>, %arg7: memref<16x128xf32, #tpu.memory_space<vmem>>) attributes {dimension_semantics = [#tpu.dimension_semantics<parallel>, #tpu.dimension_semantics<parallel>, #tpu.dimension_semantics<arbitrary>], iteration_bounds = array<i64: 1, 1, 1>, scalar_prefetch = 0 : i64, scratch_operands = 1 : i64, tpu.core_type = #tpu.core_type<tc>, window_params = [{transform_indices = @transform_0, window_bounds = array<i64: 16, 128>}, {transform_indices = @transform_1, window_bounds = array<i64: 128, 128>}, {transform_indices = @transform_2, window_bounds = array<i64: 1, 128>}, {transform_indices = @transform_3, window_bounds = array<i64: 16, 128>}]} {
    %c0_i32 = arith.constant 0 : i32
    %0 = arith.cmpi eq, %arg2, %c0_i32 : i32
    %1 = arith.extui %0 : i1 to i32
    %c0_i32_0 = arith.constant 0 : i32
    %2 = arith.cmpi ne, %1, %c0_i32_0 : i32
    scf.if %2 {
      %cst_10 = arith.constant 0.000000e+00 : f32
      %13 = vector.broadcast %cst_10 : f32 to vector<16x128xf32>
      %c0_11 = arith.constant 0 : index
      %c0_12 = arith.constant 0 : index
      %14 = vector.load %arg7[%c0_11, %c0_12] : memref<16x128xf32, #tpu.memory_space<vmem>>, vector<16x128xf32>
      tpu.vector_store %arg7[%c0_11, %c0_12], %13 {strides = array<i32>} : memref<16x128xf32, #tpu.memory_space<vmem>>, vector<16x128xf32>,
    } else {
    }
    %c0 = arith.constant 0 : index
    %c0_1 = arith.constant 0 : index
    %3 = vector.load %arg7[%c0, %c0_1] : memref<16x128xf32, #tpu.memory_space<vmem>>, vector<16x128xf32>
    %c0_2 = arith.constant 0 : index
    %c0_3 = arith.constant 0 : index
    %4 = vector.load %arg3[%c0_2, %c0_3] : memref<16x128xf32, #tpu.memory_space<vmem>>, vector<16x128xf32>
    %5 = arith.truncf %4 : vector<16x128xf32> to vector<16x128xbf16>
    %c0_4 = arith.constant 0 : index
    %c0_5 = arith.constant 0 : index
    %6 = vector.load %arg4[%c0_4, %c0_5] : memref<128x128xbf16, #tpu.memory_space<vmem>>, vector<128x128xbf16>
    %cst = arith.constant dense<0.000000e+00> : vector<16x128xf32>
    %7 = tpu.matmul %5, %6, %cst {dimension_numbers = #tpu.dot_dimension_numbers<[1], [0], [0], [1], [0, 0, 1, 1], [], []>} : vector<16x128xbf16>, vector<128x128xbf16>, vector<16x128xf32> -> vector<16x128xf32>
    %8 = arith.addf %3, %7 : vector<16x128xf32>
    %c0_6 = arith.constant 0 : index
    %c0_7 = arith.constant 0 : index
    %9 = vector.load %arg7[%c0_6, %c0_7] : memref<16x128xf32, #tpu.memory_space<vmem>>, vector<16x128xf32>
    tpu.vector_store %arg7[%c0_6, %c0_7], %8 {strides = array<i32>} : memref<16x128xf32, #tpu.memory_space<vmem>>, vector<16x128xf32>,
    %c0_i32_8 = arith.constant 0 : i32
    %10 = arith.cmpi eq, %arg2, %c0_i32_8 : i32
    %11 = arith.extui %10 : i1 to i32
    %c0_i32_9 = arith.constant 0 : i32
    %12 = arith.cmpi ne, %11, %c0_i32_9 : i32
    scf.if %12 {
      %c0_10 = arith.constant 0 : index
      %c0_11 = arith.constant 0 : index
      %13 = vector.load %arg7[%c0_10, %c0_11] : memref<16x128xf32, #tpu.memory_space<vmem>>, vector<16x128xf32>
      %c0_12 = arith.constant 0 : index
      %c0_13 = arith.constant 0 : index
      %14 = vector.load %arg5[%c0_12, %c0_13] : memref<1x128xf32, #tpu.memory_space<vmem>>, vector<1x128xf32>
      %15 = vector.broadcast %14 : vector<1x128xf32> to vector<16x128xf32>
      %16 = arith.addf %13, %15 : vector<16x128xf32>
      %cst_14 = arith.constant 0.000000e+00 : f32
      %17 = vector.broadcast %cst_14 : f32 to vector<16x128xf32>
      %18 = arith.maximumf %16, %17 : vector<16x128xf32>
      %c0_15 = arith.constant 0 : index
      %c0_16 = arith.constant 0 : index
      %19 = vector.load %arg6[%c0_15, %c0_16] : memref<16x128xf32, #tpu.memory_space<vmem>>, vector<16x128xf32>
      tpu.vector_store %arg6[%c0_15, %c0_16], %18 {strides = array<i32>} : memref<16x128xf32, #tpu.memory_space<vmem>>, vector<16x128xf32>,
    } else {
    }
    return
  }
  func.func @transform_0(%arg0: i32, %arg1: i32, %arg2: i32) -> (i32, i32) {
    %c0_i32 = arith.constant 0 : i32
    return %arg0, %arg2 : i32, i32
  }
  func.func @transform_1(%arg0: i32, %arg1: i32, %arg2: i32) -> (i32, i32) {
    %c0_i32 = arith.constant 0 : i32
    return %arg2, %arg1 : i32, i32
  }
  func.func @transform_2(%arg0: i32, %arg1: i32, %arg2: i32) -> (i32, i32) {
    %c0_i32 = arith.constant 0 : i32
    %c0_i32_0 = arith.constant 0 : i32
    return %c0_i32, %arg1 : i32, i32
  }
  func.func @transform_3(%arg0: i32, %arg1: i32, %arg2: i32) -> (i32, i32) {
    %c0_i32 = arith.constant 0 : i32
    return %arg0, %arg1 : i32, i32
  }
}

module attributes {stable_mosaic.version = 11 : i64} {
  func.func @_ln_kernel(%arg0: i32, %arg1: memref<16x32xf32, #tpu.memory_space<vmem>>, %arg2: memref<16x32xf32, #tpu.memory_space<vmem>>, %arg3: memref<1x32xf32, #tpu.memory_space<vmem>>, %arg4: memref<1x32xf32, #tpu.memory_space<vmem>>, %arg5: memref<16x32xf32, #tpu.memory_space<vmem>>) attributes {dimension_semantics = [#tpu.dimension_semantics<parallel>], iteration_bounds = array<i64: 1>, scalar_prefetch = 0 : i64, scratch_operands = 0 : i64, tpu.core_type = #tpu.core_type<tc>, window_params = [{transform_indices = @transform_0, window_bounds = array<i64: 16, 32>}, {transform_indices = @transform_1, window_bounds = array<i64: 16, 32>}, {pipeline_mode = #tpu.pipeline_mode<synchronous>, transform_indices = @transform_2, window_bounds = array<i64: 1, 32>}, {pipeline_mode = #tpu.pipeline_mode<synchronous>, transform_indices = @transform_3, window_bounds = array<i64: 1, 32>}, {transform_indices = @transform_4, window_bounds = array<i64: 16, 32>}]} {
    %c0 = arith.constant 0 : index
    %c0_0 = arith.constant 0 : index
    %0 = vector.load %arg1[%c0, %c0_0] : memref<16x32xf32, #tpu.memory_space<vmem>>, vector<16x32xf32>
    %c0_1 = arith.constant 0 : index
    %c0_2 = arith.constant 0 : index
    %1 = vector.load %arg2[%c0_1, %c0_2] : memref<16x32xf32, #tpu.memory_space<vmem>>, vector<16x32xf32>
    %2 = arith.addf %0, %1 : vector<16x32xf32>
    %cst = arith.constant dense<0.000000e+00> : vector<16xf32>
    %3 = vector.multi_reduction <add>, %2, %cst [1] : vector<16x32xf32> to vector<16xf32>
    %4 = vector.shape_cast %3 : vector<16xf32> to vector<16x1xf32>
    %cst_3 = arith.constant 3.200000e+01 : f32
    %5 = vector.broadcast %cst_3 : f32 to vector<16x1xf32>
    %6 = arith.divf %4, %5 : vector<16x1xf32>
    %7 = vector.broadcast %6 : vector<16x1xf32> to vector<16x32xf32>
    %8 = arith.subf %2, %7 : vector<16x32xf32>
    %9 = arith.mulf %8, %8 : vector<16x32xf32>
    %cst_4 = arith.constant dense<0.000000e+00> : vector<16xf32>
    %10 = vector.multi_reduction <add>, %9, %cst_4 [1] : vector<16x32xf32> to vector<16xf32>
    %11 = vector.shape_cast %10 : vector<16xf32> to vector<16x1xf32>
    %cst_5 = arith.constant 3.200000e+01 : f32
    %12 = vector.broadcast %cst_5 : f32 to vector<16x1xf32>
    %13 = arith.divf %11, %12 : vector<16x1xf32>
    %cst_6 = arith.constant 9.99999974E-6 : f32
    %14 = vector.broadcast %cst_6 : f32 to vector<16x1xf32>
    %15 = arith.addf %13, %14 : vector<16x1xf32>
    %16 = math.rsqrt %15 : vector<16x1xf32>
    %17 = vector.broadcast %6 : vector<16x1xf32> to vector<16x32xf32>
    %18 = arith.subf %2, %17 : vector<16x32xf32>
    %19 = vector.broadcast %16 : vector<16x1xf32> to vector<16x32xf32>
    %20 = arith.mulf %18, %19 : vector<16x32xf32>
    %c0_7 = arith.constant 0 : index
    %c0_8 = arith.constant 0 : index
    %21 = vector.load %arg3[%c0_7, %c0_8] : memref<1x32xf32, #tpu.memory_space<vmem>>, vector<1x32xf32>
    %22 = vector.broadcast %21 : vector<1x32xf32> to vector<16x32xf32>
    %23 = arith.mulf %20, %22 : vector<16x32xf32>
    %c0_9 = arith.constant 0 : index
    %c0_10 = arith.constant 0 : index
    %24 = vector.load %arg4[%c0_9, %c0_10] : memref<1x32xf32, #tpu.memory_space<vmem>>, vector<1x32xf32>
    %25 = vector.broadcast %24 : vector<1x32xf32> to vector<16x32xf32>
    %26 = arith.addf %23, %25 : vector<16x32xf32>
    %c0_11 = arith.constant 0 : index
    %c0_12 = arith.constant 0 : index
    %27 = vector.load %arg5[%c0_11, %c0_12] : memref<16x32xf32, #tpu.memory_space<vmem>>, vector<16x32xf32>
    tpu.vector_store %arg5[%c0_11, %c0_12], %26 {strides = array<i32>} : memref<16x32xf32, #tpu.memory_space<vmem>>, vector<16x32xf32>,
    return
  }
  func.func @transform_0(%arg0: i32) -> (i32, i32) {
    %c0_i32 = arith.constant 0 : i32
    %c0_i32_0 = arith.constant 0 : i32
    return %arg0, %c0_i32 : i32, i32
  }
  func.func @transform_1(%arg0: i32) -> (i32, i32) {
    %c0_i32 = arith.constant 0 : i32
    %c0_i32_0 = arith.constant 0 : i32
    return %arg0, %c0_i32 : i32, i32
  }
  func.func @transform_2(%arg0: i32) -> (i32, i32) {
    %c0_i32 = arith.constant 0 : i32
    %c0_i32_0 = arith.constant 0 : i32
    %c0_i32_1 = arith.constant 0 : i32
    return %c0_i32, %c0_i32_0 : i32, i32
  }
  func.func @transform_3(%arg0: i32) -> (i32, i32) {
    %c0_i32 = arith.constant 0 : i32
    %c0_i32_0 = arith.constant 0 : i32
    %c0_i32_1 = arith.constant 0 : i32
    return %c0_i32, %c0_i32_0 : i32, i32
  }
  func.func @transform_4(%arg0: i32) -> (i32, i32) {
    %c0_i32 = arith.constant 0 : i32
    %c0_i32_0 = arith.constant 0 : i32
    return %arg0, %c0_i32 : i32, i32
  }
}

module attributes {stable_mosaic.version = 11 : i64} {
  func.func @_ln_kernel(%arg0: i32, %arg1: memref<16x32xf32, #tpu.memory_space<vmem>>, %arg2: memref<1x32xf32, #tpu.memory_space<vmem>>, %arg3: memref<1x32xf32, #tpu.memory_space<vmem>>, %arg4: memref<16x32xf32, #tpu.memory_space<vmem>>) attributes {dimension_semantics = [#tpu.dimension_semantics<parallel>], iteration_bounds = array<i64: 1>, scalar_prefetch = 0 : i64, scratch_operands = 0 : i64, tpu.core_type = #tpu.core_type<tc>, window_params = [{transform_indices = @transform_0, window_bounds = array<i64: 16, 32>}, {pipeline_mode = #tpu.pipeline_mode<synchronous>, transform_indices = @transform_1, window_bounds = array<i64: 1, 32>}, {pipeline_mode = #tpu.pipeline_mode<synchronous>, transform_indices = @transform_2, window_bounds = array<i64: 1, 32>}, {transform_indices = @transform_3, window_bounds = array<i64: 16, 32>}]} {
    %c0 = arith.constant 0 : index
    %c0_0 = arith.constant 0 : index
    %0 = vector.load %arg1[%c0, %c0_0] : memref<16x32xf32, #tpu.memory_space<vmem>>, vector<16x32xf32>
    %cst = arith.constant dense<0.000000e+00> : vector<16xf32>
    %1 = vector.multi_reduction <add>, %0, %cst [1] : vector<16x32xf32> to vector<16xf32>
    %2 = vector.shape_cast %1 : vector<16xf32> to vector<16x1xf32>
    %cst_1 = arith.constant 3.200000e+01 : f32
    %3 = vector.broadcast %cst_1 : f32 to vector<16x1xf32>
    %4 = arith.divf %2, %3 : vector<16x1xf32>
    %5 = vector.broadcast %4 : vector<16x1xf32> to vector<16x32xf32>
    %6 = arith.subf %0, %5 : vector<16x32xf32>
    %7 = arith.mulf %6, %6 : vector<16x32xf32>
    %cst_2 = arith.constant dense<0.000000e+00> : vector<16xf32>
    %8 = vector.multi_reduction <add>, %7, %cst_2 [1] : vector<16x32xf32> to vector<16xf32>
    %9 = vector.shape_cast %8 : vector<16xf32> to vector<16x1xf32>
    %cst_3 = arith.constant 3.200000e+01 : f32
    %10 = vector.broadcast %cst_3 : f32 to vector<16x1xf32>
    %11 = arith.divf %9, %10 : vector<16x1xf32>
    %cst_4 = arith.constant 9.99999974E-6 : f32
    %12 = vector.broadcast %cst_4 : f32 to vector<16x1xf32>
    %13 = arith.addf %11, %12 : vector<16x1xf32>
    %14 = math.rsqrt %13 : vector<16x1xf32>
    %15 = vector.broadcast %4 : vector<16x1xf32> to vector<16x32xf32>
    %16 = arith.subf %0, %15 : vector<16x32xf32>
    %17 = vector.broadcast %14 : vector<16x1xf32> to vector<16x32xf32>
    %18 = arith.mulf %16, %17 : vector<16x32xf32>
    %c0_5 = arith.constant 0 : index
    %c0_6 = arith.constant 0 : index
    %19 = vector.load %arg2[%c0_5, %c0_6] : memref<1x32xf32, #tpu.memory_space<vmem>>, vector<1x32xf32>
    %20 = vector.broadcast %19 : vector<1x32xf32> to vector<16x32xf32>
    %21 = arith.mulf %18, %20 : vector<16x32xf32>
    %c0_7 = arith.constant 0 : index
    %c0_8 = arith.constant 0 : index
    %22 = vector.load %arg3[%c0_7, %c0_8] : memref<1x32xf32, #tpu.memory_space<vmem>>, vector<1x32xf32>
    %23 = vector.broadcast %22 : vector<1x32xf32> to vector<16x32xf32>
    %24 = arith.addf %21, %23 : vector<16x32xf32>
    %c0_9 = arith.constant 0 : index
    %c0_10 = arith.constant 0 : index
    %25 = vector.load %arg4[%c0_9, %c0_10] : memref<16x32xf32, #tpu.memory_space<vmem>>, vector<16x32xf32>
    tpu.vector_store %arg4[%c0_9, %c0_10], %24 {strides = array<i32>} : memref<16x32xf32, #tpu.memory_space<vmem>>, vector<16x32xf32>,
    return
  }
  func.func @transform_0(%arg0: i32) -> (i32, i32) {
    %c0_i32 = arith.constant 0 : i32
    %c0_i32_0 = arith.constant 0 : i32
    return %arg0, %c0_i32 : i32, i32
  }
  func.func @transform_1(%arg0: i32) -> (i32, i32) {
    %c0_i32 = arith.constant 0 : i32
    %c0_i32_0 = arith.constant 0 : i32
    %c0_i32_1 = arith.constant 0 : i32
    return %c0_i32, %c0_i32_0 : i32, i32
  }
  func.func @transform_2(%arg0: i32) -> (i32, i32) {
    %c0_i32 = arith.constant 0 : i32
    %c0_i32_0 = arith.constant 0 : i32
    %c0_i32_1 = arith.constant 0 : i32
    return %c0_i32, %c0_i32_0 : i32, i32
  }
  func.func @transform_3(%arg0: i32) -> (i32, i32) {
    %c0_i32 = arith.constant 0 : i32
    %c0_i32_0 = arith.constant 0 : i32
    return %arg0, %c0_i32 : i32, i32
  }
}

module attributes {stable_mosaic.version = 11 : i64} {
  func.func @_matmul_kernel(%arg0: i32, %arg1: i32, %arg2: i32, %arg3: memref<16x128xf32, #tpu.memory_space<vmem>>, %arg4: memref<128x128xbf16, #tpu.memory_space<vmem>>, %arg5: memref<1x128xf32, #tpu.memory_space<vmem>>, %arg6: memref<16x128xf32, #tpu.memory_space<vmem>>, %arg7: memref<16x128xf32, #tpu.memory_space<vmem>>) attributes {dimension_semantics = [#tpu.dimension_semantics<parallel>, #tpu.dimension_semantics<parallel>, #tpu.dimension_semantics<arbitrary>], iteration_bounds = array<i64: 1, 1, 1>, scalar_prefetch = 0 : i64, scratch_operands = 1 : i64, tpu.core_type = #tpu.core_type<tc>, window_params = [{transform_indices = @transform_0, window_bounds = array<i64: 16, 128>}, {transform_indices = @transform_1, window_bounds = array<i64: 128, 128>}, {transform_indices = @transform_2, window_bounds = array<i64: 1, 128>}, {transform_indices = @transform_3, window_bounds = array<i64: 16, 128>}]} {
    %c0_i32 = arith.constant 0 : i32
    %0 = arith.cmpi eq, %arg2, %c0_i32 : i32
    %1 = arith.extui %0 : i1 to i32
    %c0_i32_0 = arith.constant 0 : i32
    %2 = arith.cmpi ne, %1, %c0_i32_0 : i32
    scf.if %2 {
      %cst_10 = arith.constant 0.000000e+00 : f32
      %13 = vector.broadcast %cst_10 : f32 to vector<16x128xf32>
      %c0_11 = arith.constant 0 : index
      %c0_12 = arith.constant 0 : index
      %14 = vector.load %arg7[%c0_11, %c0_12] : memref<16x128xf32, #tpu.memory_space<vmem>>, vector<16x128xf32>
      tpu.vector_store %arg7[%c0_11, %c0_12], %13 {strides = array<i32>} : memref<16x128xf32, #tpu.memory_space<vmem>>, vector<16x128xf32>,
    } else {
    }
    %c0 = arith.constant 0 : index
    %c0_1 = arith.constant 0 : index
    %3 = vector.load %arg7[%c0, %c0_1] : memref<16x128xf32, #tpu.memory_space<vmem>>, vector<16x128xf32>
    %c0_2 = arith.constant 0 : index
    %c0_3 = arith.constant 0 : index
    %4 = vector.load %arg3[%c0_2, %c0_3] : memref<16x128xf32, #tpu.memory_space<vmem>>, vector<16x128xf32>
    %5 = arith.truncf %4 : vector<16x128xf32> to vector<16x128xbf16>
    %c0_4 = arith.constant 0 : index
    %c0_5 = arith.constant 0 : index
    %6 = vector.load %arg4[%c0_4, %c0_5] : memref<128x128xbf16, #tpu.memory_space<vmem>>, vector<128x128xbf16>
    %cst = arith.constant dense<0.000000e+00> : vector<16x128xf32>
    %7 = tpu.matmul %5, %6, %cst {dimension_numbers = #tpu.dot_dimension_numbers<[1], [0], [0], [1], [0, 0, 1, 1], [], []>} : vector<16x128xbf16>, vector<128x128xbf16>, vector<16x128xf32> -> vector<16x128xf32>
    %8 = arith.addf %3, %7 : vector<16x128xf32>
    %c0_6 = arith.constant 0 : index
    %c0_7 = arith.constant 0 : index
    %9 = vector.load %arg7[%c0_6, %c0_7] : memref<16x128xf32, #tpu.memory_space<vmem>>, vector<16x128xf32>
    tpu.vector_store %arg7[%c0_6, %c0_7], %8 {strides = array<i32>} : memref<16x128xf32, #tpu.memory_space<vmem>>, vector<16x128xf32>,
    %c0_i32_8 = arith.constant 0 : i32
    %10 = arith.cmpi eq, %arg2, %c0_i32_8 : i32
    %11 = arith.extui %10 : i1 to i32
    %c0_i32_9 = arith.constant 0 : i32
    %12 = arith.cmpi ne, %11, %c0_i32_9 : i32
    scf.if %12 {
      %c0_10 = arith.constant 0 : index
      %c0_11 = arith.constant 0 : index
      %13 = vector.load %arg7[%c0_10, %c0_11] : memref<16x128xf32, #tpu.memory_space<vmem>>, vector<16x128xf32>
      %c0_12 = arith.constant 0 : index
      %c0_13 = arith.constant 0 : index
      %14 = vector.load %arg5[%c0_12, %c0_13] : memref<1x128xf32, #tpu.memory_space<vmem>>, vector<1x128xf32>
      %15 = vector.broadcast %14 : vector<1x128xf32> to vector<16x128xf32>
      %16 = arith.addf %13, %15 : vector<16x128xf32>
      %c0_14 = arith.constant 0 : index
      %c0_15 = arith.constant 0 : index
      %17 = vector.load %arg6[%c0_14, %c0_15] : memref<16x128xf32, #tpu.memory_space<vmem>>, vector<16x128xf32>
      tpu.vector_store %arg6[%c0_14, %c0_15], %16 {strides = array<i32>} : memref<16x128xf32, #tpu.memory_space<vmem>>, vector<16x128xf32>,
    } else {
    }
    return
  }
  func.func @transform_0(%arg0: i32, %arg1: i32, %arg2: i32) -> (i32, i32) {
    %c0_i32 = arith.constant 0 : i32
    return %arg0, %arg2 : i32, i32
  }
  func.func @transform_1(%arg0: i32, %arg1: i32, %arg2: i32) -> (i32, i32) {
    %c0_i32 = arith.constant 0 : i32
    return %arg2, %arg1 : i32, i32
  }
  func.func @transform_2(%arg0: i32, %arg1: i32, %arg2: i32) -> (i32, i32) {
    %c0_i32 = arith.constant 0 : i32
    %c0_i32_0 = arith.constant 0 : i32
    return %c0_i32, %arg1 : i32, i32
  }
  func.func @transform_3(%arg0: i32, %arg1: i32, %arg2: i32) -> (i32, i32) {
    %c0_i32 = arith.constant 0 : i32
    return %arg0, %arg1 : i32, i32
  }
}

</mosaic_0001>

<bundles_post_ra>
// kernel: seq2seq_forward.59
= control target key start
LH: loop header
LB: loop body
LE: loop exit
PB: predicated region body
PF: predicated region fallthrough
CT: control target
= control target key end

     0   :  { %vm23_vm0 = vcmask 261120   ;;  %s136_s0 = inlined_call_operand.vmem [shape: f32[16,32], index: 0, kind: input, shape index: {}]   ;;  %s137_s1 = inlined_call_operand.vmem [shape: f32[16,32], index: 1, kind: input, shape index: {}]   ;;  %s138_s2 = inlined_call_operand.vmem [shape: f32[1,32], index: 2, kind: input, shape index: {}]   ;;  %s139_s3 = inlined_call_operand.vmem [shape: f32[1,32], index: 3, kind: input, shape index: {}]   ;;  %s140_s4 = inlined_call_operand.vmem [shape: f32[16,32], index: 4, kind: output, shape index: {}]  }
   0x1   :  { %v17_v0 = vld [vmem:[%s136_s0] sm:$0xff]  ;;  %v18_v2 = vld [vmem:[%s136_s0 + $0x8] sm:$0xff] }
   0x2   :  { %v19_v1 = vld [vmem:[%s137_s1] sm:$0xff]  ;;  %v20_v4 = vld [vmem:[%s137_s1 + $0x8] sm:$0xff] }
   0x3   :  { %v21_v3 = vadd.f32 %v19_v1, %v17_v0  ;;  %v22_v5 = vadd.f32 %v20_v4, %v18_v2  ;;  %v75_v25 = vld [vmem:[%s138_s2] ss:$0 sm:$0xff] }
   0x4   :  { %v76_v27 = vld [vmem:[%s139_s3] ss:$0 sm:$0xff] }
   0x5   :  { %v24_v6 = vsel %vm23_vm0, %v21_v3, 0.0  ;;  %v27_v7 = vsel %vm23_vm0, %v22_v5, 0.0 }
   0x6   :  { %25 = vadd.xlane.f32.xlu0 %v24_v6 }
   0xa   :  { %28 = vadd.xlane.f32.xlu0 %v27_v7 }
  0x93   :  { %v26_v8 = vpop.xlane.xlu0 %25 }
  0x94   :  { %v31_v9 = vmul.f32 0.03125, %v26_v8 }
  0x96   :  { %v33_v10 = vsub.f32 %v21_v3, %v31_v9 }
  0x97   :  { %v29_v11 = vpop.xlane.xlu0 %28 }
  0x98   :  { %v32_v12 = vmul.f32 0.03125, %v29_v11  ;;  %v35_v13 = vmul.f32 %v33_v10, %v33_v10 }
  0x9a   :  { %v34_v14 = vsub.f32 %v22_v5, %v32_v12  ;;  %v37_v15 = vsel %vm23_vm0, %v35_v13, 0.0 }
  0x9b   :  { %38 = vadd.xlane.f32.xlu1 %v37_v15 }
  0x9c   :  { %v36_v16 = vmul.f32 %v34_v14, %v34_v14 }
  0x9e   :  { %v40_v17 = vsel %vm23_vm0, %v36_v16, 0.0 }
  0x9f   :  { %41 = vadd.xlane.f32.xlu1 %v40_v17 }
 0x128   :  { %v39_v18 = vpop.xlane.xlu1 %38 }
 0x129   :  { %v43_v19 = vmul.f32 0.03125, %v39_v18 }
 0x12b   :  { %v45_v20 = vadd.f32 1e-05, %v43_v19 }
 0x12c   :  { %v42_v21 = vpop.xlane.xlu1 %41 }
 0x12d   :  { %77 = vrsqrt.f32 %v45_v20  ;;  %v44_v22 = vmul.f32 0.03125, %v42_v21 }
 0x12f   :  { %v46_v23 = vadd.f32 1e-05, %v44_v22 }
 0x131   :  { %79 = vrsqrt.f32 %v46_v23 }
 0x137   :  { %v78_v24 = vpop.eup %77 }
 0x138   :  { %v49_v26 = vmul.f32 %v78_v24, %v33_v10 }
 0x13a   :  { %v58_v28 = vmul.f32 %v75_v25, %v49_v26 }
 0x13b   :  { %v80_v29 = vpop.eup %79 }
 0x13c   :  { %v67_v30 = vadd.f32 %v76_v27, %v58_v28  ;;  %v50_v31 = vmul.f32 %v80_v29, %v34_v14 }
 0x13e   :  { %69 = vst.msk [vmem:[%s140_s4] sm:$0xff] %vm23_vm0, %v67_v30  ;;  %v59_v32 = vmul.f32 %v75_v25, %v50_v31 }
 0x140   :  { %v68_v33 = vadd.f32 %v76_v27, %v59_v32 }
 0x142   :  { %70 = vst.msk [vmem:[%s140_s4 + $0x8] sm:$0xff] %vm23_vm0, %v68_v33 }

// kernel: seq2seq_forward.56
= control target key start
LH: loop header
LB: loop body
LE: loop exit
PB: predicated region body
PF: predicated region fallthrough
CT: control target
= control target key end

     0   :  { %v203_v0 = vmov 0.0   ;;  %vm204_vm0 = vmmov 0   ;;  %s264_s1 = inlined_call_operand.vmem [shape: bf16[128,128], index: 1, kind: input, shape index: {}]   ;;  %s265_s0 = inlined_call_operand.vmem [shape: f32[16,128], index: 0, kind: input, shape index: {}]   ;;  %s266_s2 = inlined_call_operand.vmem [shape: f32[1,128], index: 2, kind: input, shape index: {}]   ;;  %s267_s3 = inlined_call_operand.vmem [shape: f32[16,128], index: 3, kind: output, shape index: {}]  }
   0x1   :  { %173 = vmatprep.subr.bf16.mxu0 %v203_v0  ;;  %v195_v1 = vld [vmem:[%s264_s1] sm:$0xff]   ;;  %189 = vmatprep.mubr.msk.bf16.mxu0 %vm204_vm0, %v203_v0  ;;  %v196_v2 = vld [vmem:[%s264_s1 + $0x8] sm:$0xff]   ;;  %v197_v3 = vld [vmem:[%s264_s1 + $0x10] sm:$0xff]  }
   0x2   :  { %174 = vmatpush3.bf16.msra.mxu0 %v195_v1  ;;  %v198_v4 = vld [vmem:[%s264_s1 + $0x18] sm:$0xff]   ;;  %v199_v5 = vld [vmem:[%s264_s1 + $0x20] sm:$0xff]   ;;  %v200_v6 = vld [vmem:[%s264_s1 + $0x28] sm:$0xff]  }
   0x3   :  { %175 = vmatprep.subr.bf16.mxu0 %v203_v0  ;;  %v201_v7 = vld [vmem:[%s264_s1 + $0x30] sm:$0xff]   ;;  %v202_v8 = vld [vmem:[%s264_s1 + $0x38] sm:$0xff]   ;;  %v23_v9 = vld [vmem:[%s265_s0] sm:$0xff] }
   0x4   :  { %v24_v10 = vld [vmem:[%s265_s0 + $0x8] sm:$0xff]  ;;  %v163_v12 = vld [vmem:[%s266_s2] ss:$0 sm:$0xff] }
   0x5   :  { %v25_v11 = vpack.c.bf16 %v24_v10, %v23_v9 }
   0x6   :  { %176 = vmatpush3.bf16.msra.mxu0 %v196_v2 }
   0x7   :  { %177 = vmatprep.subr.bf16.mxu0 %v203_v0 }
   0xa   :  { %178 = vmatpush3.bf16.msra.mxu0 %v197_v3 }
   0xb   :  { %179 = vmatprep.subr.bf16.mxu0 %v203_v0 }
   0xe   :  { %180 = vmatpush3.bf16.msra.mxu0 %v198_v4 }
   0xf   :  { %181 = vmatprep.subr.bf16.mxu0 %v203_v0 }
  0x12   :  { %182 = vmatpush3.bf16.msra.mxu0 %v199_v5 }
  0x13   :  { %183 = vmatprep.subr.bf16.mxu0 %v203_v0 }
  0x16   :  { %184 = vmatpush3.bf16.msra.mxu0 %v200_v6 }
  0x17   :  { %185 = vmatprep.subr.bf16.mxu0 %v203_v0 }
  0x1a   :  { %186 = vmatpush3.bf16.msra.mxu0 %v201_v7 }
  0x1b   :  { %187 = vmatprep.subr.bf16.mxu0 %v203_v0 }
  0x1e   :  { %188 = vmatpush3.bf16.msra.mxu0 %v202_v8 }
  0x21   :  { %190 = vmatmul.mubr.bf16.vlgmr.msra.gmra.mrb[0].mxu0 %v25_v11 }
  0xf4   :  { %v124_v13 = vpop.f32.mrb[0].mxu0 }
  0xf5   :  { %v147_v14 = vadd.f32 %v163_v12, %v124_v13  ;;  %v191_v15 = vpop.f32.mrb[1].mxu0 }
  0xf6   :  { %v127_v16 = vpop.f32.mrb[2].mxu0 }
  0xf7   :  { %149 = vst [vmem:[%s267_s3] sm:$0xff] %v147_v14  ;;  %v148_v17 = vadd.f32 %v163_v12, %v127_v16  ;;  %v192_v18 = vpop.f32.mrb[3].mxu0 }
  0xf9   :  { %150 = vst [vmem:[%s267_s3 + $0x8] sm:$0xff] %v148_v17 }

// kernel: seq2seq_forward.45
= control target key start
LH: loop header
LB: loop body
LE: loop exit
PB: predicated region body
PF: predicated region fallthrough
CT: control target
= control target key end

     0   :  { %v205_v0 = vmov 0.0   ;;  %vm206_vm0 = vmmov 0   ;;  %s266_s1 = inlined_call_operand.vmem [shape: bf16[128,128], index: 1, kind: input, shape index: {}]   ;;  %s267_s0 = inlined_call_operand.vmem [shape: f32[16,128], index: 0, kind: input, shape index: {}]   ;;  %s268_s2 = inlined_call_operand.vmem [shape: f32[1,128], index: 2, kind: input, shape index: {}]   ;;  %s269_s3 = inlined_call_operand.vmem [shape: f32[16,128], index: 3, kind: output, shape index: {}]  }
   0x1   :  { %175 = vmatprep.subr.bf16.mxu0 %v205_v0  ;;  %v197_v1 = vld [vmem:[%s266_s1] sm:$0xff]   ;;  %191 = vmatprep.mubr.msk.bf16.mxu0 %vm206_vm0, %v205_v0  ;;  %v198_v2 = vld [vmem:[%s266_s1 + $0x8] sm:$0xff]   ;;  %v199_v3 = vld [vmem:[%s266_s1 + $0x10] sm:$0xff]  }
   0x2   :  { %176 = vmatpush3.bf16.msra.mxu0 %v197_v1  ;;  %v200_v4 = vld [vmem:[%s266_s1 + $0x18] sm:$0xff]   ;;  %v201_v5 = vld [vmem:[%s266_s1 + $0x20] sm:$0xff]   ;;  %v202_v6 = vld [vmem:[%s266_s1 + $0x28] sm:$0xff]  }
   0x3   :  { %177 = vmatprep.subr.bf16.mxu0 %v205_v0  ;;  %v203_v7 = vld [vmem:[%s266_s1 + $0x30] sm:$0xff]   ;;  %v204_v8 = vld [vmem:[%s266_s1 + $0x38] sm:$0xff]   ;;  %v23_v9 = vld [vmem:[%s267_s0] sm:$0xff] }
   0x4   :  { %v24_v10 = vld [vmem:[%s267_s0 + $0x8] sm:$0xff]  ;;  %v165_v12 = vld [vmem:[%s268_s2] ss:$0 sm:$0xff] }
   0x5   :  { %v25_v11 = vpack.c.bf16 %v24_v10, %v23_v9 }
   0x6   :  { %178 = vmatpush3.bf16.msra.mxu0 %v198_v2 }
   0x7   :  { %179 = vmatprep.subr.bf16.mxu0 %v205_v0 }
   0xa   :  { %180 = vmatpush3.bf16.msra.mxu0 %v199_v3 }
   0xb   :  { %181 = vmatprep.subr.bf16.mxu0 %v205_v0 }
   0xe   :  { %182 = vmatpush3.bf16.msra.mxu0 %v200_v4 }
   0xf   :  { %183 = vmatprep.subr.bf16.mxu0 %v205_v0 }
  0x12   :  { %184 = vmatpush3.bf16.msra.mxu0 %v201_v5 }
  0x13   :  { %185 = vmatprep.subr.bf16.mxu0 %v205_v0 }
  0x16   :  { %186 = vmatpush3.bf16.msra.mxu0 %v202_v6 }
  0x17   :  { %187 = vmatprep.subr.bf16.mxu0 %v205_v0 }
  0x1a   :  { %188 = vmatpush3.bf16.msra.mxu0 %v203_v7 }
  0x1b   :  { %189 = vmatprep.subr.bf16.mxu0 %v205_v0 }
  0x1e   :  { %190 = vmatpush3.bf16.msra.mxu0 %v204_v8 }
  0x21   :  { %192 = vmatmul.mubr.bf16.vlgmr.msra.gmra.mrb[0].mxu0 %v25_v11 }
  0xf4   :  { %v124_v13 = vpop.f32.mrb[0].mxu0 }
  0xf5   :  { %v147_v14 = vadd.f32 %v165_v12, %v124_v13  ;;  %v193_v15 = vpop.f32.mrb[1].mxu0 }
  0xf6   :  { %v127_v16 = vpop.f32.mrb[2].mxu0 }
  0xf7   :  { %v149_v17 = vmax.f32 %v147_v14, 0.0  ;;  %v148_v18 = vadd.f32 %v165_v12, %v127_v16  ;;  %v194_v19 = vpop.f32.mrb[3].mxu0 }
  0xf9   :  { %151 = vst [vmem:[%s269_s3] sm:$0xff] %v149_v17  ;;  %v150_v20 = vmax.f32 %v148_v18, 0.0 }
  0xfb   :  { %152 = vst [vmem:[%s269_s3 + $0x8] sm:$0xff] %v150_v20 }

// kernel: seq2seq_forward.57
= control target key start
LH: loop header
LB: loop body
LE: loop exit
PB: predicated region body
PF: predicated region fallthrough
CT: control target
= control target key end

     0   :  { %s988_s18 = smov 0   ;;  %s1075_s0 = inlined_call_operand.vmem [shape: f32[2,4,8,8], index: 0, kind: input, shape index: {}]   ;;  %s1076_s1 = inlined_call_operand.vmem [shape: f32[2,4,8,8], index: 1, kind: input, shape index: {}]   ;;  %s1077_s2 = inlined_call_operand.vmem [shape: f32[2,4,8,8], index: 2, kind: input, shape index: {}]   ;;  %s1078_s3 = inlined_call_operand.vmem [shape: f32[8,8], index: 3, kind: input, shape index: {}]   ;;  %s1079_s4 = inlined_call_operand.vmem [shape: f32[2,1,8], index: 4, kind: input, shape index: {}]   ;;  %s1080_s5 = inlined_call_operand.vmem [shape: f32[2,4,8,8], index: 5, kind: output, shape index: {}]  }
   0x1 LB: > { %s830_s19 = sadd.s32 4294967295, %s954_s18   ;;  %p834_p0 = scmp.ge.s32.totalorder %s954_s18, 1  ;;  %s954_s18 = sphi %s988_s18, %s15_s18  }
   0x2   : > { %p215_p1 = scmp.lt.s32.totalorder %s954_s18, 3 }
   0x4   : > { %p216_p2 = pnand %p834_p0, %p215_p1 }
   0x5   : > { %p256_p3 = scmp.lt.s32.totalorder (!%p216_p2), %s830_s19, 1  ;;  %v956_v0 = vmov (!%p216_p2), 0.0   ;;  %vm957_vm0 = vmmov (!%p216_p2), 0   ;;  %vm309_vm1 = vcmask (!%p216_p2), 64512   ;;  %v308_v25 = vld [vmem:[%s1078_s3] sm:$0xff] (!%p216_p2)  ;;  %vm556_vm2 = vcmask (!%p216_p2), 1043456  }
   0x6   : > { %219 = sbr.rel (%p216_p2) target bundleno = 786 (0x312), region = 40  ;;  %874 = vmatprep.subr.bf16.mxu0 (!%p216_p2), %v956_v0  ;;  %880 = vmatprep.subr.bf16.mxu1 (!%p216_p2), %v956_v0 }
   0x7   : > { %876 = vmatprep.mubr.msk.bf16.mxu0 (!%p216_p2), %vm957_vm0, %v956_v0  ;;  %882 = vmatprep.mubr.msk.bf16.mxu1 (!%p216_p2), %vm957_vm0, %v956_v0 }
   0xd   : > { %s1082_s19 = smov (!%p256_p3, %s830_s19), 1 }
   0xe   : > { %s1005_s20 = sshll.u32 %s1082_s19, 5  ;;  %s273_s29 = scalar_lea.vmem %s1079_s4, %s1082_s19 }
   0xf   : > { %s265_s23 = scalar_lea.vmem %s1076_s1, %s1005_s20  ;;  %s260_s26 = scalar_lea.vmem %s1075_s0, %s1005_s20  ;;  %v847_v28 = vld [vmem:[%s273_s29] ss:$0 sm:$0xff] }
  0x10   : > { %v292_v1 = vld [vmem:[%s265_s23] sm:$0xff]  ;;  %v293_v2 = vld [vmem:[%s265_s23 + $0x8] sm:$0xff]  ;;  %v294_v7 = vld [vmem:[%s265_s23 + $0x10] sm:$0xff]  ;;  %s270_s9 = scalar_lea.vmem %s1077_s2, %s1005_s20  ;;  %s278_s12 = scalar_lea.vmem %s1080_s5, %s1005_s20 }
  0x11   : > { %v280_v3 = vld [vmem:[%s260_s26] sm:$0xff]  ;;  %v296_v4 = vpack.c.bf16 %v292_v1, %v292_v1  ;;  %v297_v5 = vpack.c.bf16 %v293_v2, %v293_v2  ;;  %v281_v6 = vld [vmem:[%s260_s26 + $0x8] sm:$0xff]  ;;  %v295_v8 = vld [vmem:[%s265_s23 + $0x18] sm:$0xff]  ;;  %v298_v13 = vpack.c.bf16 %v294_v7, %v294_v7 }
  0x12   : > { %v284_v11 = vmul.f32 0.35355338, %v280_v3  ;;  %v285_v12 = vmul.f32 0.35355338, %v281_v6  ;;  %v299_v14 = vpack.c.bf16 %v295_v8, %v295_v8  ;;  %v282_v17 = vld [vmem:[%s260_s26 + $0x10] sm:$0xff]  ;;  %v283_v18 = vld [vmem:[%s260_s26 + $0x18] sm:$0xff] }
  0x13   : > { %v314_v9 = vsel %vm309_vm1, %v296_v4, 0  ;;  %v360_v10 = vsel %vm309_vm1, %v297_v5, 0  ;;  %v406_v19 = vsel %vm309_vm1, %v298_v13, 0  ;;  %v286_v21 = vmul.f32 0.35355338, %v282_v17 }
  0x14   : > { %875 = vmatpush3.bf16.xpose.msra.mxu0 %v314_v9  ;;  %881 = vmatpush3.bf16.xpose.msra.mxu1 %v360_v10  ;;  %v288_v15 = vpack.c.bf16 %v284_v11, %v284_v11  ;;  %v289_v16 = vpack.c.bf16 %v285_v12, %v285_v12  ;;  %v452_v20 = vsel %vm309_vm1, %v299_v14, 0  ;;  %v287_v22 = vmul.f32 0.35355338, %v283_v18  ;;  %v300_v12 = vld [vmem:[%s270_s9] sm:$0xff]  ;;  %v302_v18 = vld [vmem:[%s270_s9 + $0x10] sm:$0xff] }
  0x15   : > { %886 = vmatprep.subr.bf16.mxu0 %v956_v0  ;;  %892 = vmatprep.subr.bf16.mxu1 %v956_v0  ;;  %v290_v23 = vpack.c.bf16 %v286_v21, %v286_v21  ;;  %v304_v13 = vpack.c.bf16 %v300_v12, %v300_v12  ;;  %v303_v21 = vld [vmem:[%s270_s9 + $0x18] sm:$0xff] }
  0x16   : > { %v291_v24 = vpack.c.bf16 %v287_v22, %v287_v22  ;;  %v307_v22 = vpack.c.bf16 %v303_v21, %v303_v21 }
  0x17   : > { %v558_v14 = vsel %vm556_vm2, %v304_v13, 0 }
  0x1b   : > { %877 = vmatmul.mubr.msk.bf16.vlgmr.msra.gmra.mrb[0].mxu0 %vm309_vm1, %v288_v15  ;;  %883 = vmatmul.mubr.msk.bf16.vlgmr.msra.gmra.mrb[0].mxu1 %vm309_vm1, %v289_v16  ;;  %v301_v15 = vld [vmem:[%s270_s9 + $0x8] sm:$0xff] }
  0x1c   : > { %887 = vmatpush3.bf16.xpose.msra.mxu0 %v406_v19  ;;  %893 = vmatpush3.bf16.xpose.msra.mxu1 %v452_v20  ;;  %v305_v16 = vpack.c.bf16 %v301_v15, %v301_v15  ;;  %v306_v19 = vpack.c.bf16 %v302_v18, %v302_v18 }
  0x1d   : > { %888 = vmatprep.mubr.msk.bf16.mxu0 %vm957_vm0, %v956_v0  ;;  %894 = vmatprep.mubr.msk.bf16.mxu1 %vm957_vm0, %v956_v0 }
  0x1e   : > { %898 = vmatprep.subr.bf16.mxu0 %v956_v0  ;;  %904 = vmatprep.subr.bf16.mxu1 %v956_v0  ;;  %v604_v17 = vsel %vm556_vm2, %v305_v16, 0  ;;  %v650_v20 = vsel %vm556_vm2, %v306_v19, 0 }
  0x23   : > { %889 = vmatmul.mubr.msk.bf16.vlgmr.msra.gmra.mrb[4].mxu0 %vm309_vm1, %v290_v23  ;;  %895 = vmatmul.mubr.msk.bf16.vlgmr.msra.gmra.mrb[4].mxu1 %vm309_vm1, %v291_v24  ;;  %v696_v23 = vsel %vm556_vm2, %v307_v22, 0 }
  0x24   : > { %900 = vmatprep.mubr.msk.bf16.mxu0 %vm957_vm0, %v956_v0  ;;  %906 = vmatprep.mubr.msk.bf16.mxu1 %vm957_vm0, %v956_v0 }
  0x25   : > { %899 = vmatpush3.bf16.msra.mxu0 %v558_v14  ;;  %905 = vmatpush3.bf16.msra.mxu1 %v604_v17 }
  0x26   : > { %910 = vmatprep.subr.bf16.mxu0 %v956_v0  ;;  %916 = vmatprep.subr.bf16.mxu1 %v956_v0 }
  0xee   : > { %v350_v26 = vpop.f32.mrb[0].mxu0  ;;  %v396_v27 = vpop.f32.mrb[0].mxu1 }
  0xef   : > { %v351_v29 = vadd.f32 %v350_v26, %v308_v25  ;;  %v878_v30 = vpop.f32.mrb[1].mxu0  ;;  %v397_v31 = vadd.f32 %v396_v27, %v308_v25  ;;  %v884_v32 = vpop.f32.mrb[1].mxu1 }
  0xf0   : > { %v353_v33 = vpop.f32.mrb[2].mxu0  ;;  %v399_v34 = vpop.f32.mrb[2].mxu1 }
  0xf1   : > { %v879_v35 = vpop.f32.mrb[3].mxu0  ;;  %v885_v36 = vpop.f32.mrb[3].mxu1  ;;  %v501_v37 = vadd.f32 %v847_v28, %v351_v29  ;;  %v502_v38 = vadd.f32 %v847_v28, %v397_v31 }
  0xf3   : > { %v505_v39 = vsel %vm309_vm1, %v501_v37, -inf  ;;  %v508_v40 = vsel %vm309_vm1, %v502_v38, -inf }
  0xf4   : > { %506 = vmax.xlane.f32.xlu0 %v505_v39 }
  0xf6   : > { %v442_v41 = vpop.f32.mrb[4].mxu0  ;;  %v488_v42 = vpop.f32.mrb[4].mxu1 }
  0xf7   : > { %v443_v43 = vadd.f32 %v442_v41, %v308_v25  ;;  %v890_v44 = vpop.f32.mrb[5].mxu0  ;;  %v489_v45 = vadd.f32 %v488_v42, %v308_v25  ;;  %v896_v46 = vpop.f32.mrb[5].mxu1 }
  0xf8   : > { %509 = vmax.xlane.f32.xlu0 %v508_v40  ;;  %v445_v47 = vpop.f32.mrb[6].mxu0  ;;  %v491_v48 = vpop.f32.mrb[6].mxu1 }
  0xf9   : > { %v891_v49 = vpop.f32.mrb[7].mxu0  ;;  %v897_v50 = vpop.f32.mrb[7].mxu1  ;;  %v503_v51 = vadd.f32 %v847_v28, %v443_v43  ;;  %v504_v52 = vadd.f32 %v847_v28, %v489_v45 }
  0xfb   : > { %v511_v53 = vsel %vm309_vm1, %v503_v51, -inf  ;;  %v514_v54 = vsel %vm309_vm1, %v504_v52, -inf }
  0xfc   : > { %512 = vmax.xlane.f32.xlu1 %v511_v53 }
 0x100   : > { %515 = vmax.xlane.f32.xlu1 %v514_v54 }
 0x181   : > { %v507_v55 = vpop.xlane.xlu0 %506 }
 0x182   : > { %v517_v56 = vsub.f32 %v501_v37, %v507_v55 }
 0x184   : > { %v521_v57 = vmul.f32 1.442695, %v517_v56 }
 0x185   : > { %v510_v58 = vpop.xlane.xlu0 %509 }
 0x186   : > { %932 = vpow2.f32 %v521_v57  ;;  %v518_v59 = vsub.f32 %v502_v38, %v510_v58 }
 0x188   : > { %v523_v60 = vmul.f32 1.442695, %v518_v59 }
 0x189   : > { %v513_v61 = vpop.xlane.xlu1 %512 }
 0x18a   : > { %934 = vpow2.f32 %v523_v60  ;;  %v519_v62 = vsub.f32 %v503_v51, %v513_v61 }
 0x18c   : > { %v525_v63 = vmul.f32 1.442695, %v519_v62 }
 0x18d   : > { %v516_v1 = vpop.xlane.xlu1 %515 }
 0x18e   : > { %936 = vpow2.f32 %v525_v63  ;;  %v520_v2 = vsub.f32 %v504_v52, %v516_v1 }
 0x190   : > { %v933_v3 = vpop.eup %932  ;;  %v527_v4 = vmul.f32 1.442695, %v520_v2 }
 0x191   : > { %v529_v5 = vsel %vm309_vm1, %v933_v3, 0.0 }
 0x192   : > { %938 = vpow2.f32 %v527_v4  ;;  %530 = vadd.xlane.f32.xlu0 %v529_v5 }
 0x194   : > { %v935_v6 = vpop.eup %934 }
 0x195   : > { %v532_v7 = vsel %vm309_vm1, %v935_v6, 0.0 }
 0x196   : > { %533 = vadd.xlane.f32.xlu1 %v532_v7 }
 0x198   : > { %v937_v8 = vpop.eup %936 }
 0x199   : > { %v535_v9 = vsel %vm309_vm1, %v937_v8, 0.0 }
 0x19a   : > { %536 = vadd.xlane.f32.xlu0 %v535_v9 }
 0x19c   : > { %v939_v10 = vpop.eup %938 }
 0x19d   : > { %v538_v11 = vsel %vm309_vm1, %v939_v10, 0.0 }
 0x19e   : > { %539 = vadd.xlane.f32.xlu1 %v538_v11 }
 0x21f   : > { %v531_v24 = vpop.xlane.xlu0 %530 }
 0x220   : > { %940 = vrcp.f32 %v531_v24 }
 0x223   : > { %v534_v25 = vpop.xlane.xlu1 %533 }
 0x224   : > { %942 = vrcp.f32 %v534_v25 }
 0x227   : > { %v537_v26 = vpop.xlane.xlu0 %536 }
 0x228   : > { %944 = vrcp.f32 %v537_v26 }
 0x22a   : > { %v941_v27 = vpop.eup %940 }
 0x22b   : > { %v545_v28 = vmul.f32 %v941_v27, %v933_v3  ;;  %v540_v29 = vpop.xlane.xlu1 %539 }
 0x22c   : > { %946 = vrcp.f32 %v540_v29 }
 0x22d   : > { %v549_v30 = vpack.c.bf16 %v545_v28, %v545_v28 }
 0x22e   : > { %v943_v31 = vpop.eup %942 }
 0x22f   : > { %v546_v32 = vmul.f32 %v943_v31, %v935_v6  ;;  %901 = vmatmul.mubr.msk.bf16.vlgmr.msra.gmra.mrb[8].mxu0 %vm309_vm1, %v549_v30 }
 0x230   : > { %911 = vmatpush3.bf16.msra.mxu0 %v650_v20  ;;  %912 = vmatprep.mubr.msk.bf16.mxu0 %vm957_vm0, %v956_v0 }
 0x231   : > { %v550_v33 = vpack.c.bf16 %v546_v32, %v546_v32 }
 0x232   : > { %v945_v34 = vpop.eup %944 }
 0x233   : > { %v547_v35 = vmul.f32 %v945_v34, %v937_v8  ;;  %907 = vmatmul.mubr.msk.bf16.vlgmr.msra.gmra.mrb[8].mxu1 %vm309_vm1, %v550_v33 }
 0x234   : > { %917 = vmatpush3.bf16.msra.mxu1 %v696_v23  ;;  %918 = vmatprep.mubr.msk.bf16.mxu1 %vm957_vm0, %v956_v0 }
 0x235   : > { %v551_v36 = vpack.c.bf16 %v547_v35, %v547_v35 }
 0x236   : > { %v947_v37 = vpop.eup %946 }
 0x237   : > { %v548_v38 = vmul.f32 %v947_v37, %v939_v10  ;;  %913 = vmatmul.mubr.msk.bf16.vlgmr.msra.gmra.mrb[12].mxu0 %vm309_vm1, %v551_v36 }
 0x239   : > { %v552_v39 = vpack.c.bf16 %v548_v38, %v548_v38 }
 0x23b   : > { %919 = vmatmul.mubr.msk.bf16.vlgmr.msra.gmra.mrb[12].mxu1 %vm309_vm1, %v552_v39 }
 0x302   : > { %v594_v40 = vpop.f32.mrb[8].mxu0 }
 0x303   : > { %738 = vst.msk [vmem:[%s278_s12] sm:$0xff] %vm309_vm1, %v594_v40  ;;  %v902_v41 = vpop.f32.mrb[9].mxu0 }
 0x304   : > { %v597_v42 = vpop.f32.mrb[10].mxu0 }
 0x305   : > { %v903_v43 = vpop.f32.mrb[11].mxu0 }
 0x306   : > { %v640_v44 = vpop.f32.mrb[8].mxu1 }
 0x307   : > { %739 = vst.msk [vmem:[%s278_s12 + $0x8] sm:$0xff] %vm309_vm1, %v640_v44  ;;  %v908_v0 = vpop.f32.mrb[9].mxu1 }
 0x308   : > { %v643_v45 = vpop.f32.mrb[10].mxu1 }
 0x309   : > { %v909_v46 = vpop.f32.mrb[11].mxu1 }
 0x30a   : > { %v686_v47 = vpop.f32.mrb[12].mxu0 }
 0x30b   : > { %740 = vst.msk [vmem:[%s278_s12 + $0x10] sm:$0xff] %vm309_vm1, %v686_v47  ;;  %v914_v48 = vpop.f32.mrb[13].mxu0 }
 0x30c   : > { %v689_v49 = vpop.f32.mrb[14].mxu0 }
 0x30d   : > { %v915_v50 = vpop.f32.mrb[15].mxu0 }
 0x30e   : > { %v732_v51 = vpop.f32.mrb[12].mxu1 }
 0x30f   : > { %741 = vst.msk [vmem:[%s278_s12 + $0x18] sm:$0xff] %vm309_vm1, %v732_v51  ;;  %v920_v52 = vpop.f32.mrb[13].mxu1 }
 0x310   : > { %v735_v53 = vpop.f32.mrb[14].mxu1 }
 0x311   : > { %v921_v54 = vpop.f32.mrb[15].mxu1 }
 0x312 PF: > { %s15_s18 = sadd.s32 1, %s954_s18  }
 0x313   : > { %p12_p4 = scmp.ge.s32.totalorder %s15_s18, 4  }
 0x315   :  { %14 = sbr.rel (!%p12_p4) target bundleno = 1 (0x1), region = 79 }

// kernel: seq2seq_forward.55
= control target key start
LH: loop header
LB: loop body
LE: loop exit
PB: predicated region body
PF: predicated region fallthrough
CT: control target
= control target key end

     0   :  { %vm16_vm0 = vcmask 261120   ;;  %s118_s0 = inlined_call_operand.vmem [shape: f32[16,32], index: 0, kind: input, shape index: {}]   ;;  %s119_s1 = inlined_call_operand.vmem [shape: f32[1,32], index: 1, kind: input, shape index: {}]   ;;  %s120_s2 = inlined_call_operand.vmem [shape: f32[1,32], index: 2, kind: input, shape index: {}]   ;;  %s121_s3 = inlined_call_operand.vmem [shape: f32[16,32], index: 3, kind: output, shape index: {}]  }
   0x1   :  { %v14_v0 = vld [vmem:[%s118_s0] sm:$0xff]  ;;  %v15_v1 = vld [vmem:[%s118_s0 + $0x8] sm:$0xff] }
   0x2   :  { %v17_v2 = vsel %vm16_vm0, %v14_v0, 0.0  ;;  %v20_v3 = vsel %vm16_vm0, %v15_v1, 0.0  ;;  %v68_v21 = vld [vmem:[%s119_s1] ss:$0 sm:$0xff] }
   0x3   :  { %18 = vadd.xlane.f32.xlu0 %v17_v2  ;;  %v69_v23 = vld [vmem:[%s120_s2] ss:$0 sm:$0xff] }
   0x7   :  { %21 = vadd.xlane.f32.xlu0 %v20_v3 }
  0x90   :  { %v19_v4 = vpop.xlane.xlu0 %18 }
  0x91   :  { %v24_v5 = vmul.f32 0.03125, %v19_v4 }
  0x93   :  { %v26_v6 = vsub.f32 %v14_v0, %v24_v5 }
  0x94   :  { %v22_v7 = vpop.xlane.xlu0 %21 }
  0x95   :  { %v25_v8 = vmul.f32 0.03125, %v22_v7  ;;  %v28_v9 = vmul.f32 %v26_v6, %v26_v6 }
  0x97   :  { %v27_v10 = vsub.f32 %v15_v1, %v25_v8  ;;  %v30_v11 = vsel %vm16_vm0, %v28_v9, 0.0 }
  0x98   :  { %31 = vadd.xlane.f32.xlu1 %v30_v11 }
  0x99   :  { %v29_v12 = vmul.f32 %v27_v10, %v27_v10 }
  0x9b   :  { %v33_v13 = vsel %vm16_vm0, %v29_v12, 0.0 }
  0x9c   :  { %34 = vadd.xlane.f32.xlu1 %v33_v13 }
 0x125   :  { %v32_v14 = vpop.xlane.xlu1 %31 }
 0x126   :  { %v36_v15 = vmul.f32 0.03125, %v32_v14 }
 0x128   :  { %v38_v16 = vadd.f32 1e-05, %v36_v15 }
 0x129   :  { %v35_v17 = vpop.xlane.xlu1 %34 }
 0x12a   :  { %70 = vrsqrt.f32 %v38_v16  ;;  %v37_v18 = vmul.f32 0.03125, %v35_v17 }
 0x12c   :  { %v39_v19 = vadd.f32 1e-05, %v37_v18 }
 0x12e   :  { %72 = vrsqrt.f32 %v39_v19 }
 0x134   :  { %v71_v20 = vpop.eup %70 }
 0x135   :  { %v42_v22 = vmul.f32 %v71_v20, %v26_v6 }
 0x137   :  { %v51_v24 = vmul.f32 %v68_v21, %v42_v22 }
 0x138   :  { %v73_v25 = vpop.eup %72 }
 0x139   :  { %v60_v26 = vadd.f32 %v69_v23, %v51_v24  ;;  %v43_v27 = vmul.f32 %v73_v25, %v27_v10 }
 0x13b   :  { %62 = vst.msk [vmem:[%s121_s3] sm:$0xff] %vm16_vm0, %v60_v26  ;;  %v52_v28 = vmul.f32 %v68_v21, %v43_v27 }
 0x13d   :  { %v61_v29 = vadd.f32 %v69_v23, %v52_v28 }
 0x13f   :  { %63 = vst.msk [vmem:[%s121_s3 + $0x8] sm:$0xff] %vm16_vm0, %v61_v29 }

// kernel: seq2seq_forward.81
= control target key start
LH: loop header
LB: loop body
LE: loop exit
PB: predicated region body
PF: predicated region fallthrough
CT: control target
= control target key end

     0   :  { %v243_v1 = vmov 0.0   ;;  %vm244_vm0 = vmmov 0   ;;  %s313_s0 = inlined_call_operand.vmem [shape: f32[16,128], index: 0, kind: input, shape index: {}]   ;;  %s314_s1 = inlined_call_operand.vmem [shape: bf16[128,128], index: 1, kind: input, shape index: {}]   ;;  %s315_s2 = inlined_call_operand.vmem [shape: f32[1,128], index: 2, kind: input, shape index: {}]   ;;  %s316_s3 = inlined_call_operand.hbm [shape: f32[16,128], index: 3, kind: output, shape index: {}]  }
   0x1   :  { %v211_v0 = vld [vmem:[%s314_s1] sm:$0xff]   ;;  %186 = vmatprep.subr.bf16.mxu0 %v243_v1  ;;  %v212_v2 = vld [vmem:[%s314_s1 + $0x8] sm:$0xff]   ;;  %202 = vmatprep.mubr.msk.bf16.mxu0 %vm244_vm0, %v243_v1  ;;  %v213_v3 = vld [vmem:[%s314_s1 + $0x10] sm:$0xff]  }
   0x2   :  { %187 = vmatpush3.bf16.msra.mxu0 %v211_v0 }
   0x3   :  { %188 = vmatprep.subr.bf16.mxu0 %v243_v1 }
   0x6   :  { %189 = vmatpush3.bf16.msra.mxu0 %v212_v2 }
   0x7   :  { %190 = vmatprep.subr.bf16.mxu0 %v243_v1 }
   0x8   :  { %8 = vsyncpa [#allocation4], 0  ;;  %v214_v4 = vld [vmem:[%s314_s1 + $0x18] sm:$0xff]   ;;  %v215_v5 = vld [vmem:[%s314_s1 + $0x20] sm:$0xff]   ;;  %s245_s7 = smov [#allocation3]  }
   0x9   :  { %v216_v6 = vld [vmem:[%s314_s1 + $0x28] sm:$0xff]   ;;  %v217_v7 = vld [vmem:[%s314_s1 + $0x30] sm:$0xff]   ;;  %v218_v8 = vld [vmem:[%s314_s1 + $0x38] sm:$0xff]   ;;  %s157_s8 = sshll.u32 %s245_s7, 4  ;;  %s158_s8 = int_to_ptr.vmem [resolvable:$true] %s157_s8 }
   0xa   :  { %191 = vmatpush3.bf16.msra.mxu0 %v213_v3  ;;  %v24_v9 = vld [vmem:[%s313_s0] sm:$0xff]  ;;  %v25_v10 = vld [vmem:[%s313_s0 + $0x8] sm:$0xff]  ;;  %s219_s0 = scalar_lea.vmem %s158_s8, 256  ;;  %p224_p1 = scmp.lt.s32.totalorder %s158_s8, %s158_s8 }
   0xb   :  { %192 = vmatprep.subr.bf16.mxu0 %v243_v1  ;;  %v26_v11 = vpack.c.bf16 %v25_v10, %v24_v9  ;;  %v176_v12 = vld [vmem:[%s315_s2] ss:$0 sm:$0xff]  ;;  %p220_p0 = scmp.ne.s32.totalorder %s158_s8, %s219_s0  ;;  %p225_p2 = scmp.lt.s32.totalorder %s219_s0, %s219_s0 }
   0xd   :  { %p226_p3 = por %p225_p2, %p224_p1 }
   0xe   :  { %193 = vmatpush3.bf16.msra.mxu0 %v214_v4 }
   0xf   :  { %194 = vmatprep.subr.bf16.mxu0 %v243_v1  ;;  %p227_p4 = pnand %p226_p3, %p220_p0 }
  0x12   :  { %195 = vmatpush3.bf16.msra.mxu0 %v215_v5 }
  0x13   :  { %196 = vmatprep.subr.bf16.mxu0 %v243_v1 }
  0x16   :  { %197 = vmatpush3.bf16.msra.mxu0 %v216_v6 }
  0x17   :  { %198 = vmatprep.subr.bf16.mxu0 %v243_v1 }
  0x1a   :  { %199 = vmatpush3.bf16.msra.mxu0 %v217_v7 }
  0x1b   :  { %200 = vmatprep.subr.bf16.mxu0 %v243_v1 }
  0x1e   :  { %201 = vmatpush3.bf16.msra.mxu0 %v218_v8 }
  0x21   :  { %203 = vmatmul.mubr.bf16.vlgmr.msra.gmra.mrb[0].mxu0 %v26_v11 }
  0xf4   :  { %v125_v13 = vpop.f32.mrb[0].mxu0 }
  0xf5   :  { %v148_v14 = vadd.f32 %v176_v12, %v125_v13  ;;  %v204_v15 = vpop.f32.mrb[1].mxu0 }
  0xf6   :  { %v128_v16 = vpop.f32.mrb[2].mxu0 }
  0xf7   :  { %150 = vst [vmem:[#allocation3] sm:$0xff] %v148_v14  ;;  %v149_v17 = vadd.f32 %v176_v12, %v128_v16  ;;  %v205_v18 = vpop.f32.mrb[3].mxu0 }
  0xf9   :  { %151 = vst [vmem:[#allocation3 + $0x8] sm:$0xff] %v149_v17 }
  0xfa   :  { %230 = shalt.err (!%p227_p4)
}
  0xfb   :  { %s231_s9 = scalar_lea.hbm %s316_s3, 256 }
  0xfc   :  { %p232_p5 = scmp.ne.s32.totalorder %s316_s3, %s231_s9  ;;  %p235_p6 = scmp.lt.u32.totalorder %s231_s9, %s316_s3 }
  0xfe   :  { %p237_p7 = pnand %p235_p6, %p232_p5 }
 0x100   :  { %240 = shalt.err (!%p237_p7)
}
 0x101   :  { %s246_s14 = smov 128   ;;  %s247_s15 = smov 8  }
 0x102   :  { %163 = dma.vmem_to_hbm [thread:$0]  %s158_s8, 256, %s316_s3, [#allocation4], %s246_s14, %s246_s14, %s247_s15  }
 0x103   :  { %241 = dma.done.wait [#allocation4], 256  }
 0x104   :  { %242 = vsyncadd [#allocation4], 4294967040 }
 0x105   :  { %167 = vsyncpa [#allocation4], 1 }

</bundles_post_ra>
